<compile_context>
chip_gen: v7x
topology: tpu7x:2x2x1
jax: 0.10.0
libtpu: 0.0.40
codegen_flags: <defaults>
</compile_context>

<pallas_src>
import functools
import math

import numpy as np

import jax
import jax.numpy as jnp
from jax import lax
from jax.experimental import pallas as pl
from jax.experimental.pallas import tpu as pltpu

LANES = 128           # lane-dense label padding (vreg lane width)
MAX_BATCH_BLOCK = 64  # per-grid-step batch rows (MXU fill vs. padding waste)


def _round_up(x, m):
    return ((x + m - 1) // m) * m


def _vmem_limit_bytes():
    # ~100 MiB on v5e/v6e (128 MiB physical); ~54 MiB on v7x (64 MiB physical).
    try:
        cap = pltpu.get_tpu_info().vmem_capacity_bytes
    except Exception:
        cap = 64 * 1024 * 1024
    return int(min(100 * 1024 * 1024, int(cap * 0.85)))


def _bilstm_crf_kernel(x_ref, w_ih0_ref, w_hh0_ref, b0_ref,
                       w_ih1_ref, w_hh1_ref, b1_ref,
                       w_out_ref, b_out_ref, trans_t_ref,
                       score_ref, path_ref, feats_ref,
                       gf_ref, gb_ref, sf_ref, sb_ref, psi_ref,
                       *, T, B, H, L, Lp, start_label_id):
    """One batch block: 2-layer biLSTM + hidden2label + full Viterbi decode."""
    f32 = jnp.float32
    bf16 = jnp.bfloat16
    H4 = 4 * H

    def mxu(a, b):
        # Bulk GEMM: bf16 MXU inputs, f32 accumulation.
        return jnp.dot(a.astype(bf16), b.astype(bf16), preferred_element_type=f32)

    def sigmoid(z):
        # tanh form -> EUP transcendental, no VALU divide in the recurrence.
        return 0.5 * jnp.tanh(0.5 * z) + 0.5

    def lstm_cell(g, c):
        # PyTorch LSTM gate order: i, f, g, o.
        i_g = sigmoid(g[:, 0 * H:1 * H])
        f_g = sigmoid(g[:, 1 * H:2 * H])
        g_g = jnp.tanh(g[:, 2 * H:3 * H])
        o_g = sigmoid(g[:, 3 * H:4 * H])
        c_n = f_g * c + i_g * g_g
        h_n = o_g * jnp.tanh(c_n)
        return h_n, c_n

    def split_gates(g):
        # Wide fused-direction GEMM result -> per-direction gate buffers.
        gf_ref[...] = g[:, :H4].reshape(T, B, H4)
        gb_ref[...] = g[:, H4:].reshape(T, B, H4)

    def run_bilstm(w_hh_ref):
        # Fused fwd/bwd recurrence: iteration i handles t=i (forward) and
        # t=T-1-i (backward).  Recurrent matmul is bf16 x bf16 -> f32.
        w_hh_f = w_hh_ref[0].astype(bf16)
        w_hh_b = w_hh_ref[1].astype(bf16)

        def step(i, carry):
            hf, cf, hb, cb = carry
            tb = T - 1 - i
            g_f = gf_ref[i] + jnp.dot(hf.astype(bf16), w_hh_f,
                                      preferred_element_type=f32)
            g_b = gb_ref[tb] + jnp.dot(hb.astype(bf16), w_hh_b,
                                       preferred_element_type=f32)
            hf, cf = lstm_cell(g_f, cf)
            hb, cb = lstm_cell(g_b, cb)
            # TODO(synk): H=32 < 128 lanes -> masked partial stores in the hot
            # serial loop; acceptable at this size.
            sf_ref[i] = hf
            sb_ref[tb] = hb
            return hf, cf, hb, cb

        zero = jnp.zeros((B, H), f32)
        lax.fori_loop(0, T, step, (zero, zero, zero, zero))

    # ---- layer 0: one fused [T*B, D] @ [D, 8H] GEMM (both directions) ----
    # TODO(synk): for Longformer-length T the hoisted GEMMs / gate scratch
    # should be time-tiled (emit_pipeline) and stored in bf16 to fit v7x VMEM.
    x_flat = x_ref[...].reshape(T * B, -1)
    split_gates(mxu(x_flat, w_ih0_ref[...]) + b0_ref[...])
    run_bilstm(w_hh0_ref)

    # ---- layer 1: input = [fwd | bwd] of layer 0; two [T*B, H]@[H, 8H] GEMMs ----
    s0f = sf_ref[...].reshape(T * B, H)
    s0b = sb_ref[...].reshape(T * B, H)
    w1 = w_ih1_ref[...]
    split_gates(mxu(s0f, w1[:H]) + mxu(s0b, w1[H:]) + b1_ref[...])
    run_bilstm(w_hh1_ref)          # overwrites sf/sb with layer-1 hidden states

    # TODO(synk): nn.Dropout(0.2) is treated as identity (inference semantics).

    # ---- hidden2label: lane-dense [T*B, 2H] @ [2H, Lp] projection ----
    s1f = sf_ref[...].reshape(T * B, H)
    s1b = sb_ref[...].reshape(T * B, H)
    w_out = w_out_ref[...]
    feats = mxu(s1f, w_out[:H]) + mxu(s1b, w_out[H:]) + b_out_ref[...]
    feats_ref[...] = feats.reshape(T, B, Lp)

    # ---- Viterbi forward recursion: static unroll over the L real prev labels ----
    # trans_t[prev, next] = trans[next, prev]; padded entries = -10000 so the
    # padded labels never win.  Running (max, first-argmax) matches np.argmax.
    trans_t = trans_t_ref[...]
    trans_rows = [trans_t[j:j + 1, :] for j in range(L)]      # each [1, Lp]
    lab = lax.broadcasted_iota(jnp.int32, (B, Lp), 1)
    delta0 = jnp.where(lab == start_label_id, 0.0, -10000.0).astype(f32)

    def vstep(t, delta):                                      # delta: [B, Lp]
        best = delta[:, 0:1] + trans_rows[0]
        arg = jnp.zeros((B, Lp), jnp.int32)
        for j in range(1, L):
            cand = delta[:, j:j + 1] + trans_rows[j]
            better = cand > best                              # strict > -> first-index tie-break
            best = jnp.where(better, cand, best)
            arg = jnp.where(better, j, arg)
        psi_ref[t] = arg
        return best + feats_ref[t]

    delta = lax.fori_loop(1, T, vstep, delta0)

    m_fin = jnp.max(delta, axis=-1, keepdims=True)            # [B, 1]
    score_ref[...] = m_fin
    last = jnp.min(jnp.where(delta >= m_fin, lab, Lp), axis=-1).astype(jnp.int32)
    path_ref[T - 1] = last

    # ---- Viterbi backtracking in-kernel (psi never leaves VMEM) ----
    def backstep(i, cur):                                     # cur: [B] int32
        t = T - 2 - i
        prev = jnp.sum(jnp.where(lab == cur[:, None], psi_ref[t + 1], 0), axis=-1)
        path_ref[t] = prev
        return prev

    lax.fori_loop(0, T - 1, backstep, last)


@functools.partial(jax.jit, static_argnames=("H", "L", "start_label_id"))
def _forward_impl(x, w_ih0, w_hh0, b0, w_ih1, w_hh1, b1, w_out, b_out, trans,
                  *, H, L, start_label_id):
    """x: [B, T, D] float32 (stand-in for the Longformer sequence output)."""
    B, T, D = x.shape
    Lp = LANES
    BB = min(MAX_BATCH_BLOCK, _round_up(B, 8))
    Bp = _round_up(B, BB)

    # Pad batch to full sublanes / the batch block and go time-major.
    x_p = jnp.zeros((Bp, T, D), x.dtype).at[:B].set(x)
    x_tbd = jnp.transpose(x_p, (1, 0, 2))                     # [T, Bp, D]

    # Fuse fwd/bwd direction weights along the gate (output) axis.
    w_ih0_cat = jnp.concatenate([w_ih0[0], w_ih0[1]], axis=-1)   # [D, 8H]
    b0_cat = jnp.concatenate([b0[0], b0[1]], axis=-1)            # [1, 8H]
    w_ih1_cat = jnp.concatenate([w_ih1[0], w_ih1[1]], axis=-1)   # [2H, 8H]
    b1_cat = jnp.concatenate([b1[0], b1[1]], axis=-1)            # [1, 8H]

    # Lane-dense label padding: padded emission columns = 0, padded transitions
    # = -10000 (so padded labels never win).  Transitions passed pre-transposed.
    w_out_p = jnp.zeros((2 * H, Lp), jnp.float32).at[:, :L].set(w_out)
    b_out_p = jnp.zeros((1, Lp), jnp.float32).at[:, :L].set(b_out)
    trans_t_p = jnp.full((Lp, Lp), -10000.0, jnp.float32).at[:L, :L].set(trans.T)

    kernel = functools.partial(_bilstm_crf_kernel, T=T, B=BB, H=H, L=L, Lp=Lp,
                               start_label_id=start_label_id)

    def wspec(shape):
        return pl.BlockSpec(shape, lambda b: (0,) * len(shape))

    score_p, path_p, feats_p = pl.pallas_call(
        kernel,
        out_shape=(jax.ShapeDtypeStruct((Bp, 1), jnp.float32),       # score
                   jax.ShapeDtypeStruct((T, Bp), jnp.int32),         # path (time-major)
                   jax.ShapeDtypeStruct((T, Bp, Lp), jnp.float32)),  # emissions
        grid_spec=pltpu.PrefetchScalarGridSpec(
            num_scalar_prefetch=0,
            grid=(Bp // BB,),                                        # batch blocks
            in_specs=[
                pl.BlockSpec((T, BB, D), lambda b: (0, b, 0)),       # x, time-major
                wspec((D, 8 * H)), wspec((2, H, 4 * H)), wspec((1, 8 * H)),
                wspec((2 * H, 8 * H)), wspec((2, H, 4 * H)), wspec((1, 8 * H)),
                wspec((2 * H, Lp)), wspec((1, Lp)), wspec((Lp, Lp)),
            ],
            out_specs=(
                pl.BlockSpec((BB, 1), lambda b: (b, 0)),
                pl.BlockSpec((T, BB), lambda b: (0, b)),
                pl.BlockSpec((T, BB, Lp), lambda b: (0, b, 0)),
            ),
            scratch_shapes=[
                pltpu.VMEM((T, BB, 4 * H), jnp.float32),   # fwd input gates
                pltpu.VMEM((T, BB, 4 * H), jnp.float32),   # bwd input gates
                pltpu.VMEM((T, BB, H), jnp.float32),       # fwd hidden sequence
                pltpu.VMEM((T, BB, H), jnp.float32),       # bwd hidden sequence
                pltpu.VMEM((T, BB, Lp), jnp.int32),        # psi (backtrack pointers)
            ]),
        compiler_params=pltpu.CompilerParams(
            dimension_semantics=("parallel",),
            vmem_limit_bytes=_vmem_limit_bytes()),
    )(x_tbd, w_ih0_cat, w_hh0, b0_cat, w_ih1_cat, w_hh1, b1_cat,
      w_out_p, b_out_p, trans_t_p)

    score = score_p[:B, 0]
    path = jnp.transpose(path_p)[:B]                              # [B, T]
    feats = jnp.transpose(feats_p, (1, 0, 2))[:B, :, :L]
    return score, path, feats


def longformer_bilstm_crf_forward(x, params):
    # TODO(synk): the external Longformer/BERT encoder is not translatable;
    # its sequence output is modeled as the input `x`.
    return _forward_impl(
        x, params["w_ih0"], params["w_hh0"], params["b0"],
        params["w_ih1"], params["w_hh1"], params["b1"],
        params["w_out"], params["b_out"], params["transitions"],
        H=params["H"], L=params["L"], start_label_id=params["start_label_id"])


def init_params(key, D, H, L, start_label_id, stop_label_id):
    ks = jax.random.split(key, 10)
    bound_lstm = 1.0 / math.sqrt(H)

    def u(kk, shape, bound):
        return jax.random.uniform(kk, shape, jnp.float32, -bound, bound)

    # LSTM weights, stacked [forward, backward], pre-transposed for x @ W.
    w_ih0 = u(ks[0], (2, D, 4 * H), bound_lstm)
    w_hh0 = u(ks[1], (2, H, 4 * H), bound_lstm)
    b0 = u(ks[2], (2, 1, 4 * H), bound_lstm) + u(ks[3], (2, 1, 4 * H), bound_lstm)
    w_ih1 = u(ks[4], (2, 2 * H, 4 * H), bound_lstm)
    w_hh1 = u(ks[5], (2, H, 4 * H), bound_lstm)
    b1 = u(ks[6], (2, 1, 4 * H), bound_lstm) + u(ks[7], (2, 1, 4 * H), bound_lstm)

    # hidden2label: xavier_uniform weight, zero bias (pre-transposed -> [2H, L]).
    bound_lin = math.sqrt(6.0 / (L + 2 * H))
    w_out = u(ks[8], (2 * H, L), bound_lin)
    b_out = jnp.zeros((1, L), jnp.float32)

    # CRF transitions: randn, start row / stop column forced to -10000.
    trans = jax.random.normal(ks[9], (L, L), jnp.float32)
    trans = trans.at[start_label_id, :].set(-10000.0)
    trans = trans.at[:, stop_label_id].set(-10000.0)

    return dict(H=H, L=L, start_label_id=start_label_id,
                w_ih0=w_ih0, w_hh0=w_hh0, b0=b0,
                w_ih1=w_ih1, w_hh1=w_hh1, b1=b1,
                w_out=w_out, b_out=b_out, transitions=trans)


# ----------------------- pure-numpy reference (for checking) -----------------------
def ref_bilstm_feats(x, p):
    xb = np.asarray(x, np.float32)
    B, _, _ = xb.shape
    H = p["H"]

    def sigmoid(z):
        return 1.0 / (1.0 + np.exp(-z))

    def bilstm(inp, w_ih, w_hh, b):
        w_ih = np.asarray(w_ih)
        w_hh = np.asarray(w_hh)
        b = np.asarray(b)[:, 0, :]
        Tt = inp.shape[1]
        out = np.zeros((B, Tt, 2 * H), np.float32)
        for d in range(2):
            h = np.zeros((B, H), np.float32)
            c = np.zeros((B, H), np.float32)
            order = range(Tt) if d == 0 else range(Tt - 1, -1, -1)
            for t in order:
                g = inp[:, t] @ w_ih[d] + h @ w_hh[d] + b[d]
                i = sigmoid(g[:, :H])
                f = sigmoid(g[:, H:2 * H])
                gg = np.tanh(g[:, 2 * H:3 * H])
                o = sigmoid(g[:, 3 * H:])
                c = f * c + i * gg
                h = o * np.tanh(c)
                out[:, t, d * H:(d + 1) * H] = h
        return out

    s0 = bilstm(xb, p["w_ih0"], p["w_hh0"], p["b0"])
    s1 = bilstm(s0, p["w_ih1"], p["w_hh1"], p["b1"])
    feats = s1 @ np.asarray(p["w_out"]) + np.asarray(p["b_out"])
    return feats.astype(np.float32)


def ref_viterbi(feats, trans, start):
    feats = np.asarray(feats, np.float32)
    trans = np.asarray(trans, np.float32)
    B, T, L = feats.shape
    delta = np.full((B, L), -10000.0, np.float32)
    delta[:, start] = 0.0
    psi = np.zeros((B, T, L), np.int64)
    for t in range(1, T):
        sc = trans[None, :, :] + delta[:, None, :]
        psi[:, t] = np.argmax(sc, -1)
        delta = sc.max(-1).astype(np.float32) + feats[:, t]
    score = delta.max(-1)
    path = np.zeros((B, T), np.int64)
    path[:, -1] = delta.argmax(-1)
    for t in range(T - 2, -1, -1):
        path[:, t] = psi[np.arange(B), t + 1, path[:, t + 1]]
    return score, path


if __name__ == "__main__":
    # Small shapes consistent with the module: hidden_size scaled 768 -> 64,
    # so LSTM input D = hidden_size = 64, per-direction hidden H = 32.
    B, T = 2, 8
    H = 32
    D = 2 * H
    L = 6                      # num_labels
    start_id, stop_id = 4, 5

    key = jax.random.PRNGKey(0)
    kx, kp = jax.random.split(key)
    params = init_params(kp, D, H, L, start_id, stop_id)

    # Stand-in for the Longformer/BERT sequence output.
    x = jax.random.normal(kx, (B, T, D), jnp.float32)

    score, path, feats = longformer_bilstm_crf_forward(x, params)
    jax.block_until_ready((score, path, feats))

    score = np.asarray(score)
    path = np.asarray(path)
    feats = np.asarray(feats)

    # BiLSTM + Linear emissions vs f32 numpy reference.  Tolerance covers the
    # bf16 MXU inputs used for all GEMMs in the kernel.
    ref_feats = ref_bilstm_feats(x, params)
    np.testing.assert_allclose(feats, ref_feats, rtol=5e-2, atol=5e-2)

    # Viterbi decode checked exactly, using the kernel's own emissions.
    ref_score, ref_path = ref_viterbi(feats, params["transitions"], start_id)
    np.testing.assert_allclose(score, ref_score, rtol=1e-4, atol=1e-4)
    assert np.array_equal(path.astype(np.int64), ref_path)

    print("KERNEL_OK")
</pallas_src>

<mosaic_0001>
module attributes {stable_mosaic.version = 11 : i64} {
  func.func @_bilstm_crf_kernel(%arg0: i32, %arg1: memref<8x8x64xf32, #tpu.memory_space<vmem>>, %arg2: memref<64x256xf32, #tpu.memory_space<vmem>>, %arg3: memref<2x32x128xf32, #tpu.memory_space<vmem>>, %arg4: memref<1x256xf32, #tpu.memory_space<vmem>>, %arg5: memref<64x256xf32, #tpu.memory_space<vmem>>, %arg6: memref<2x32x128xf32, #tpu.memory_space<vmem>>, %arg7: memref<1x256xf32, #tpu.memory_space<vmem>>, %arg8: memref<64x128xf32, #tpu.memory_space<vmem>>, %arg9: memref<1x128xf32, #tpu.memory_space<vmem>>, %arg10: memref<128x128xf32, #tpu.memory_space<vmem>>, %arg11: memref<8x1xf32, #tpu.memory_space<vmem>>, %arg12: memref<8x8xi32, #tpu.memory_space<vmem>>, %arg13: memref<8x8x128xf32, #tpu.memory_space<vmem>>, %arg14: memref<8x8x128xf32, #tpu.memory_space<vmem>>, %arg15: memref<8x8x128xf32, #tpu.memory_space<vmem>>, %arg16: memref<8x8x32xf32, #tpu.memory_space<vmem>>, %arg17: memref<8x8x32xf32, #tpu.memory_space<vmem>>, %arg18: memref<8x8x128xi32, #tpu.memory_space<vmem>>) attributes {dimension_semantics = [#tpu.dimension_semantics<parallel>], iteration_bounds = array<i64: 1>, scalar_prefetch = 0 : i64, scratch_operands = 5 : i64, tpu.core_type = #tpu.core_type<tc>, window_params = [{transform_indices = @transform_0, window_bounds = array<i64: 8, 8, 64>}, {pipeline_mode = #tpu.pipeline_mode<synchronous>, transform_indices = @transform_1, window_bounds = array<i64: 64, 256>}, {pipeline_mode = #tpu.pipeline_mode<synchronous>, transform_indices = @transform_2, window_bounds = array<i64: 2, 32, 128>}, {pipeline_mode = #tpu.pipeline_mode<synchronous>, transform_indices = @transform_3, window_bounds = array<i64: 1, 256>}, {pipeline_mode = #tpu.pipeline_mode<synchronous>, transform_indices = @transform_4, window_bounds = array<i64: 64, 256>}, {pipeline_mode = #tpu.pipeline_mode<synchronous>, transform_indices = @transform_5, window_bounds = array<i64: 2, 32, 128>}, {pipeline_mode = #tpu.pipeline_mode<synchronous>, transform_indices = @transform_6, window_bounds = array<i64: 1, 256>}, {pipeline_mode = #tpu.pipeline_mode<synchronous>, transform_indices = @transform_7, window_bounds = array<i64: 64, 128>}, {pipeline_mode = #tpu.pipeline_mode<synchronous>, transform_indices = @transform_8, window_bounds = array<i64: 1, 128>}, {pipeline_mode = #tpu.pipeline_mode<synchronous>, transform_indices = @transform_9, window_bounds = array<i64: 128, 128>}, {transform_indices = @transform_10, window_bounds = array<i64: 8, 1>}, {transform_indices = @transform_11, window_bounds = array<i64: 8, 8>}, {transform_indices = @transform_12, window_bounds = array<i64: 8, 8, 128>}]} {
    %c0 = arith.constant 0 : index
    %c0_0 = arith.constant 0 : index
    %c0_1 = arith.constant 0 : index
    %0 = vector.load %arg1[%c0, %c0_0, %c0_1] : memref<8x8x64xf32, #tpu.memory_space<vmem>>, vector<8x8x64xf32>
    %1 = vector.shape_cast %0 : vector<8x8x64xf32> to vector<64x64xf32>
    %c0_2 = arith.constant 0 : index
    %c0_3 = arith.constant 0 : index
    %2 = vector.load %arg2[%c0_2, %c0_3] : memref<64x256xf32, #tpu.memory_space<vmem>>, vector<64x256xf32>
    %3 = arith.truncf %1 : vector<64x64xf32> to vector<64x64xbf16>
    %4 = arith.truncf %2 : vector<64x256xf32> to vector<64x256xbf16>
    %cst = arith.constant dense<0.000000e+00> : vector<64x256xf32>
    %5 = tpu.matmul %3, %4, %cst {dimension_numbers = #tpu.dot_dimension_numbers<[1], [0], [0], [1], [0, 0, 1, 1], [], []>} : vector<64x64xbf16>, vector<64x256xbf16>, vector<64x256xf32> -> vector<64x256xf32>
    %c0_4 = arith.constant 0 : index
    %c0_5 = arith.constant 0 : index
    %6 = vector.load %arg4[%c0_4, %c0_5] : memref<1x256xf32, #tpu.memory_space<vmem>>, vector<1x256xf32>
    %7 = vector.broadcast %6 : vector<1x256xf32> to vector<64x256xf32>
    %8 = arith.addf %5, %7 : vector<64x256xf32>
    %9 = vector.extract_strided_slice %8 {offsets = [0, 0], sizes = [64, 128], strides = [1, 1]} : vector<64x256xf32> to vector<64x128xf32>
    %10 = vector.shape_cast %9 : vector<64x128xf32> to vector<8x8x128xf32>
    %c0_6 = arith.constant 0 : index
    %c0_7 = arith.constant 0 : index
    %c0_8 = arith.constant 0 : index
    %11 = vector.load %arg14[%c0_6, %c0_7, %c0_8] : memref<8x8x128xf32, #tpu.memory_space<vmem>>, vector<8x8x128xf32>
    tpu.vector_store %arg14[%c0_6, %c0_7, %c0_8], %10 {strides = array<i32>} : memref<8x8x128xf32, #tpu.memory_space<vmem>>, vector<8x8x128xf32>,
    %12 = vector.extract_strided_slice %8 {offsets = [0, 128], sizes = [64, 128], strides = [1, 1]} : vector<64x256xf32> to vector<64x128xf32>
    %13 = vector.shape_cast %12 : vector<64x128xf32> to vector<8x8x128xf32>
    %c0_9 = arith.constant 0 : index
    %c0_10 = arith.constant 0 : index
    %c0_11 = arith.constant 0 : index
    %14 = vector.load %arg15[%c0_9, %c0_10, %c0_11] : memref<8x8x128xf32, #tpu.memory_space<vmem>>, vector<8x8x128xf32>
    tpu.vector_store %arg15[%c0_9, %c0_10, %c0_11], %13 {strides = array<i32>} : memref<8x8x128xf32, #tpu.memory_space<vmem>>, vector<8x8x128xf32>,
    %c0_12 = arith.constant 0 : index
    %c0_13 = arith.constant 0 : index
    %c0_14 = arith.constant 0 : index
    %15 = vector.load %arg3[%c0_12, %c0_13, %c0_14] : memref<2x32x128xf32, #tpu.memory_space<vmem>>, vector<1x32x128xf32>
    %16 = vector.shape_cast %15 : vector<1x32x128xf32> to vector<32x128xf32>
    %17 = arith.truncf %16 : vector<32x128xf32> to vector<32x128xbf16>
    %c1 = arith.constant 1 : index
    %c0_15 = arith.constant 0 : index
    %c0_16 = arith.constant 0 : index
    %18 = vector.load %arg3[%c1, %c0_15, %c0_16] : memref<2x32x128xf32, #tpu.memory_space<vmem>>, vector<1x32x128xf32>
    %19 = vector.shape_cast %18 : vector<1x32x128xf32> to vector<32x128xf32>
    %20 = arith.truncf %19 : vector<32x128xf32> to vector<32x128xbf16>
    %cst_17 = arith.constant 0.000000e+00 : f32
    %21 = vector.broadcast %cst_17 : f32 to vector<8x32xf32>
    %c0_i32 = arith.constant 0 : i32
    %c8_i32 = arith.constant 8 : i32
    %22 = arith.addi %c0_i32, %c8_i32 : i32
    %c1_i32 = arith.constant 1 : i32
    %23:4 = scf.for %arg19 = %c0_i32 to %22 step %c1_i32 iter_args(%arg20 = %21, %arg21 = %21, %arg22 = %21, %arg23 = %21) -> (vector<8x32xf32>, vector<8x32xf32>, vector<8x32xf32>, vector<8x32xf32>)  : i32 {
      %c7_i32_79 = arith.constant 7 : i32
      %103 = arith.subi %c7_i32_79, %arg19 : i32
      %104 = arith.index_cast %arg19 : i32 to index
      %c0_80 = arith.constant 0 : index
      %c0_81 = arith.constant 0 : index
      %105 = vector.load %arg14[%104, %c0_80, %c0_81] : memref<8x8x128xf32, #tpu.memory_space<vmem>>, vector<1x8x128xf32>
      %106 = vector.shape_cast %105 : vector<1x8x128xf32> to vector<8x128xf32>
      %107 = arith.truncf %arg20 : vector<8x32xf32> to vector<8x32xbf16>
      %cst_82 = arith.constant dense<0.000000e+00> : vector<8x128xf32>
      %108 = tpu.matmul %107, %17, %cst_82 {dimension_numbers = #tpu.dot_dimension_numbers<[1], [0], [0], [1], [0, 0, 1, 1], [], []>} : vector<8x32xbf16>, vector<32x128xbf16>, vector<8x128xf32> -> vector<8x128xf32>
      %109 = arith.addf %106, %108 : vector<8x128xf32>
      %110 = arith.index_cast %103 : i32 to index
      %c0_83 = arith.constant 0 : index
      %c0_84 = arith.constant 0 : index
      %111 = vector.load %arg15[%110, %c0_83, %c0_84] : memref<8x8x128xf32, #tpu.memory_space<vmem>>, vector<1x8x128xf32>
      %112 = vector.shape_cast %111 : vector<1x8x128xf32> to vector<8x128xf32>
      %113 = arith.truncf %arg22 : vector<8x32xf32> to vector<8x32xbf16>
      %cst_85 = arith.constant dense<0.000000e+00> : vector<8x128xf32>
      %114 = tpu.matmul %113, %20, %cst_85 {dimension_numbers = #tpu.dot_dimension_numbers<[1], [0], [0], [1], [0, 0, 1, 1], [], []>} : vector<8x32xbf16>, vector<32x128xbf16>, vector<8x128xf32> -> vector<8x128xf32>
      %115 = arith.addf %112, %114 : vector<8x128xf32>
      %116 = vector.extract_strided_slice %109 {offsets = [0, 0], sizes = [8, 32], strides = [1, 1]} : vector<8x128xf32> to vector<8x32xf32>
      %cst_86 = arith.constant 5.000000e-01 : f32
      %117 = vector.broadcast %cst_86 : f32 to vector<8x32xf32>
      %118 = arith.mulf %117, %116 : vector<8x32xf32>
      %119 = math.tanh %118 : vector<8x32xf32>
      %cst_87 = arith.constant 5.000000e-01 : f32
      %120 = vector.broadcast %cst_87 : f32 to vector<8x32xf32>
      %121 = arith.mulf %120, %119 : vector<8x32xf32>
      %cst_88 = arith.constant 5.000000e-01 : f32
      %122 = vector.broadcast %cst_88 : f32 to vector<8x32xf32>
      %123 = arith.addf %121, %122 : vector<8x32xf32>
      %124 = vector.extract_strided_slice %109 {offsets = [0, 32], sizes = [8, 32], strides = [1, 1]} : vector<8x128xf32> to vector<8x32xf32>
      %cst_89 = arith.constant 5.000000e-01 : f32
      %125 = vector.broadcast %cst_89 : f32 to vector<8x32xf32>
      %126 = arith.mulf %125, %124 : vector<8x32xf32>
      %127 = math.tanh %126 : vector<8x32xf32>
      %cst_90 = arith.constant 5.000000e-01 : f32
      %128 = vector.broadcast %cst_90 : f32 to vector<8x32xf32>
      %129 = arith.mulf %128, %127 : vector<8x32xf32>
      %cst_91 = arith.constant 5.000000e-01 : f32
      %130 = vector.broadcast %cst_91 : f32 to vector<8x32xf32>
      %131 = arith.addf %129, %130 : vector<8x32xf32>
      %132 = vector.extract_strided_slice %109 {offsets = [0, 64], sizes = [8, 32], strides = [1, 1]} : vector<8x128xf32> to vector<8x32xf32>
      %133 = math.tanh %132 : vector<8x32xf32>
      %134 = vector.extract_strided_slice %109 {offsets = [0, 96], sizes = [8, 32], strides = [1, 1]} : vector<8x128xf32> to vector<8x32xf32>
      %cst_92 = arith.constant 5.000000e-01 : f32
      %135 = vector.broadcast %cst_92 : f32 to vector<8x32xf32>
      %136 = arith.mulf %135, %134 : vector<8x32xf32>
      %137 = math.tanh %136 : vector<8x32xf32>
      %cst_93 = arith.constant 5.000000e-01 : f32
      %138 = vector.broadcast %cst_93 : f32 to vector<8x32xf32>
      %139 = arith.mulf %138, %137 : vector<8x32xf32>
      %cst_94 = arith.constant 5.000000e-01 : f32
      %140 = vector.broadcast %cst_94 : f32 to vector<8x32xf32>
      %141 = arith.addf %139, %140 : vector<8x32xf32>
      %142 = arith.mulf %131, %arg21 : vector<8x32xf32>
      %143 = arith.mulf %123, %133 : vector<8x32xf32>
      %144 = arith.addf %142, %143 : vector<8x32xf32>
      %145 = math.tanh %144 : vector<8x32xf32>
      %146 = arith.mulf %141, %145 : vector<8x32xf32>
      %147 = vector.extract_strided_slice %115 {offsets = [0, 0], sizes = [8, 32], strides = [1, 1]} : vector<8x128xf32> to vector<8x32xf32>
      %cst_95 = arith.constant 5.000000e-01 : f32
      %148 = vector.broadcast %cst_95 : f32 to vector<8x32xf32>
      %149 = arith.mulf %148, %147 : vector<8x32xf32>
      %150 = math.tanh %149 : vector<8x32xf32>
      %cst_96 = arith.constant 5.000000e-01 : f32
      %151 = vector.broadcast %cst_96 : f32 to vector<8x32xf32>
      %152 = arith.mulf %151, %150 : vector<8x32xf32>
      %cst_97 = arith.constant 5.000000e-01 : f32
      %153 = vector.broadcast %cst_97 : f32 to vector<8x32xf32>
      %154 = arith.addf %152, %153 : vector<8x32xf32>
      %155 = vector.extract_strided_slice %115 {offsets = [0, 32], sizes = [8, 32], strides = [1, 1]} : vector<8x128xf32> to vector<8x32xf32>
      %cst_98 = arith.constant 5.000000e-01 : f32
      %156 = vector.broadcast %cst_98 : f32 to vector<8x32xf32>
      %157 = arith.mulf %156, %155 : vector<8x32xf32>
      %158 = math.tanh %157 : vector<8x32xf32>
      %cst_99 = arith.constant 5.000000e-01 : f32
      %159 = vector.broadcast %cst_99 : f32 to vector<8x32xf32>
      %160 = arith.mulf %159, %158 : vector<8x32xf32>
      %cst_100 = arith.constant 5.000000e-01 : f32
      %161 = vector.broadcast %cst_100 : f32 to vector<8x32xf32>
      %162 = arith.addf %160, %161 : vector<8x32xf32>
      %163 = vector.extract_strided_slice %115 {offsets = [0, 64], sizes = [8, 32], strides = [1, 1]} : vector<8x128xf32> to vector<8x32xf32>
      %164 = math.tanh %163 : vector<8x32xf32>
      %165 = vector.extract_strided_slice %115 {offsets = [0, 96], sizes = [8, 32], strides = [1, 1]} : vector<8x128xf32> to vector<8x32xf32>
      %cst_101 = arith.constant 5.000000e-01 : f32
      %166 = vector.broadcast %cst_101 : f32 to vector<8x32xf32>
      %167 = arith.mulf %166, %165 : vector<8x32xf32>
      %168 = math.tanh %167 : vector<8x32xf32>
      %cst_102 = arith.constant 5.000000e-01 : f32
      %169 = vector.broadcast %cst_102 : f32 to vector<8x32xf32>
      %170 = arith.mulf %169, %168 : vector<8x32xf32>
      %cst_103 = arith.constant 5.000000e-01 : f32
      %171 = vector.broadcast %cst_103 : f32 to vector<8x32xf32>
      %172 = arith.addf %170, %171 : vector<8x32xf32>
      %173 = arith.mulf %162, %arg23 : vector<8x32xf32>
      %174 = arith.mulf %154, %164 : vector<8x32xf32>
      %175 = arith.addf %173, %174 : vector<8x32xf32>
      %176 = math.tanh %175 : vector<8x32xf32>
      %177 = arith.mulf %172, %176 : vector<8x32xf32>
      %178 = arith.index_cast %arg19 : i32 to index
      %c0_104 = arith.constant 0 : index
      %c0_105 = arith.constant 0 : index
      %179 = vector.load %arg16[%178, %c0_104, %c0_105] : memref<8x8x32xf32, #tpu.memory_space<vmem>>, vector<1x8x32xf32>
      %180 = vector.shape_cast %179 : vector<1x8x32xf32> to vector<8x32xf32>
      %181 = vector.shape_cast %146 : vector<8x32xf32> to vector<1x8x32xf32>
      tpu.vector_store %arg16[%178, %c0_104, %c0_105], %181 {strides = array<i32>} : memref<8x8x32xf32, #tpu.memory_space<vmem>>, vector<1x8x32xf32>,
      %182 = arith.index_cast %103 : i32 to index
      %c0_106 = arith.constant 0 : index
      %c0_107 = arith.constant 0 : index
      %183 = vector.load %arg17[%182, %c0_106, %c0_107] : memref<8x8x32xf32, #tpu.memory_space<vmem>>, vector<1x8x32xf32>
      %184 = vector.shape_cast %183 : vector<1x8x32xf32> to vector<8x32xf32>
      %185 = vector.shape_cast %177 : vector<8x32xf32> to vector<1x8x32xf32>
      tpu.vector_store %arg17[%182, %c0_106, %c0_107], %185 {strides = array<i32>} : memref<8x8x32xf32, #tpu.memory_space<vmem>>, vector<1x8x32xf32>,
      scf.yield %146, %144, %177, %175 : vector<8x32xf32>, vector<8x32xf32>, vector<8x32xf32>, vector<8x32xf32>
    }
    %c8_i32_18 = arith.constant 8 : i32
    %c0_19 = arith.constant 0 : index
    %c0_20 = arith.constant 0 : index
    %c0_21 = arith.constant 0 : index
    %24 = vector.load %arg16[%c0_19, %c0_20, %c0_21] : memref<8x8x32xf32, #tpu.memory_space<vmem>>, vector<8x8x32xf32>
    %25 = vector.shape_cast %24 : vector<8x8x32xf32> to vector<64x32xf32>
    %c0_22 = arith.constant 0 : index
    %c0_23 = arith.constant 0 : index
    %c0_24 = arith.constant 0 : index
    %26 = vector.load %arg17[%c0_22, %c0_23, %c0_24] : memref<8x8x32xf32, #tpu.memory_space<vmem>>, vector<8x8x32xf32>
    %27 = vector.shape_cast %26 : vector<8x8x32xf32> to vector<64x32xf32>
    %c0_25 = arith.constant 0 : index
    %c0_26 = arith.constant 0 : index
    %28 = vector.load %arg5[%c0_25, %c0_26] : memref<64x256xf32, #tpu.memory_space<vmem>>, vector<64x256xf32>
    %29 = vector.extract_strided_slice %28 {offsets = [0, 0], sizes = [32, 256], strides = [1, 1]} : vector<64x256xf32> to vector<32x256xf32>
    %30 = arith.truncf %25 : vector<64x32xf32> to vector<64x32xbf16>
    %31 = arith.truncf %29 : vector<32x256xf32> to vector<32x256xbf16>
    %cst_27 = arith.constant dense<0.000000e+00> : vector<64x256xf32>
    %32 = tpu.matmul %30, %31, %cst_27 {dimension_numbers = #tpu.dot_dimension_numbers<[1], [0], [0], [1], [0, 0, 1, 1], [], []>} : vector<64x32xbf16>, vector<32x256xbf16>, vector<64x256xf32> -> vector<64x256xf32>
    %33 = vector.extract_strided_slice %28 {offsets = [32, 0], sizes = [32, 256], strides = [1, 1]} : vector<64x256xf32> to vector<32x256xf32>
    %34 = arith.truncf %27 : vector<64x32xf32> to vector<64x32xbf16>
    %35 = arith.truncf %33 : vector<32x256xf32> to vector<32x256xbf16>
    %cst_28 = arith.constant dense<0.000000e+00> : vector<64x256xf32>
    %36 = tpu.matmul %34, %35, %cst_28 {dimension_numbers = #tpu.dot_dimension_numbers<[1], [0], [0], [1], [0, 0, 1, 1], [], []>} : vector<64x32xbf16>, vector<32x256xbf16>, vector<64x256xf32> -> vector<64x256xf32>
    %37 = arith.addf %32, %36 : vector<64x256xf32>
    %c0_29 = arith.constant 0 : index
    %c0_30 = arith.constant 0 : index
    %38 = vector.load %arg7[%c0_29, %c0_30] : memref<1x256xf32, #tpu.memory_space<vmem>>, vector<1x256xf32>
    %39 = vector.broadcast %38 : vector<1x256xf32> to vector<64x256xf32>
    %40 = arith.addf %37, %39 : vector<64x256xf32>
    %41 = vector.extract_strided_slice %40 {offsets = [0, 0], sizes = [64, 128], strides = [1, 1]} : vector<64x256xf32> to vector<64x128xf32>
    %42 = vector.shape_cast %41 : vector<64x128xf32> to vector<8x8x128xf32>
    %c0_31 = arith.constant 0 : index
    %c0_32 = arith.constant 0 : index
    %c0_33 = arith.constant 0 : index
    %43 = vector.load %arg14[%c0_31, %c0_32, %c0_33] : memref<8x8x128xf32, #tpu.memory_space<vmem>>, vector<8x8x128xf32>
    tpu.vector_store %arg14[%c0_31, %c0_32, %c0_33], %42 {strides = array<i32>} : memref<8x8x128xf32, #tpu.memory_space<vmem>>, vector<8x8x128xf32>,
    %44 = vector.extract_strided_slice %40 {offsets = [0, 128], sizes = [64, 128], strides = [1, 1]} : vector<64x256xf32> to vector<64x128xf32>
    %45 = vector.shape_cast %44 : vector<64x128xf32> to vector<8x8x128xf32>
    %c0_34 = arith.constant 0 : index
    %c0_35 = arith.constant 0 : index
    %c0_36 = arith.constant 0 : index
    %46 = vector.load %arg15[%c0_34, %c0_35, %c0_36] : memref<8x8x128xf32, #tpu.memory_space<vmem>>, vector<8x8x128xf32>
    tpu.vector_store %arg15[%c0_34, %c0_35, %c0_36], %45 {strides = array<i32>} : memref<8x8x128xf32, #tpu.memory_space<vmem>>, vector<8x8x128xf32>,
    %c0_37 = arith.constant 0 : index
    %c0_38 = arith.constant 0 : index
    %c0_39 = arith.constant 0 : index
    %47 = vector.load %arg6[%c0_37, %c0_38, %c0_39] : memref<2x32x128xf32, #tpu.memory_space<vmem>>, vector<1x32x128xf32>
    %48 = vector.shape_cast %47 : vector<1x32x128xf32> to vector<32x128xf32>
    %49 = arith.truncf %48 : vector<32x128xf32> to vector<32x128xbf16>
    %c1_40 = arith.constant 1 : index
    %c0_41 = arith.constant 0 : index
    %c0_42 = arith.constant 0 : index
    %50 = vector.load %arg6[%c1_40, %c0_41, %c0_42] : memref<2x32x128xf32, #tpu.memory_space<vmem>>, vector<1x32x128xf32>
    %51 = vector.shape_cast %50 : vector<1x32x128xf32> to vector<32x128xf32>
    %52 = arith.truncf %51 : vector<32x128xf32> to vector<32x128xbf16>
    %cst_43 = arith.constant 0.000000e+00 : f32
    %53 = vector.broadcast %cst_43 : f32 to vector<8x32xf32>
    %c0_i32_44 = arith.constant 0 : i32
    %c8_i32_45 = arith.constant 8 : i32
    %54 = arith.addi %c0_i32_44, %c8_i32_45 : i32
    %c1_i32_46 = arith.constant 1 : i32
    %55:4 = scf.for %arg19 = %c0_i32_44 to %54 step %c1_i32_46 iter_args(%arg20 = %53, %arg21 = %53, %arg22 = %53, %arg23 = %53) -> (vector<8x32xf32>, vector<8x32xf32>, vector<8x32xf32>, vector<8x32xf32>)  : i32 {
      %c7_i32_79 = arith.constant 7 : i32
      %103 = arith.subi %c7_i32_79, %arg19 : i32
      %104 = arith.index_cast %arg19 : i32 to index
      %c0_80 = arith.constant 0 : index
      %c0_81 = arith.constant 0 : index
      %105 = vector.load %arg14[%104, %c0_80, %c0_81] : memref<8x8x128xf32, #tpu.memory_space<vmem>>, vector<1x8x128xf32>
      %106 = vector.shape_cast %105 : vector<1x8x128xf32> to vector<8x128xf32>
      %107 = arith.truncf %arg20 : vector<8x32xf32> to vector<8x32xbf16>
      %cst_82 = arith.constant dense<0.000000e+00> : vector<8x128xf32>
      %108 = tpu.matmul %107, %49, %cst_82 {dimension_numbers = #tpu.dot_dimension_numbers<[1], [0], [0], [1], [0, 0, 1, 1], [], []>} : vector<8x32xbf16>, vector<32x128xbf16>, vector<8x128xf32> -> vector<8x128xf32>
      %109 = arith.addf %106, %108 : vector<8x128xf32>
      %110 = arith.index_cast %103 : i32 to index
      %c0_83 = arith.constant 0 : index
      %c0_84 = arith.constant 0 : index
      %111 = vector.load %arg15[%110, %c0_83, %c0_84] : memref<8x8x128xf32, #tpu.memory_space<vmem>>, vector<1x8x128xf32>
      %112 = vector.shape_cast %111 : vector<1x8x128xf32> to vector<8x128xf32>
      %113 = arith.truncf %arg22 : vector<8x32xf32> to vector<8x32xbf16>
      %cst_85 = arith.constant dense<0.000000e+00> : vector<8x128xf32>
      %114 = tpu.matmul %113, %52, %cst_85 {dimension_numbers = #tpu.dot_dimension_numbers<[1], [0], [0], [1], [0, 0, 1, 1], [], []>} : vector<8x32xbf16>, vector<32x128xbf16>, vector<8x128xf32> -> vector<8x128xf32>
      %115 = arith.addf %112, %114 : vector<8x128xf32>
      %116 = vector.extract_strided_slice %109 {offsets = [0, 0], sizes = [8, 32], strides = [1, 1]} : vector<8x128xf32> to vector<8x32xf32>
      %cst_86 = arith.constant 5.000000e-01 : f32
      %117 = vector.broadcast %cst_86 : f32 to vector<8x32xf32>
      %118 = arith.mulf %117, %116 : vector<8x32xf32>
      %119 = math.tanh %118 : vector<8x32xf32>
      %cst_87 = arith.constant 5.000000e-01 : f32
      %120 = vector.broadcast %cst_87 : f32 to vector<8x32xf32>
      %121 = arith.mulf %120, %119 : vector<8x32xf32>
      %cst_88 = arith.constant 5.000000e-01 : f32
      %122 = vector.broadcast %cst_88 : f32 to vector<8x32xf32>
      %123 = arith.addf %121, %122 : vector<8x32xf32>
      %124 = vector.extract_strided_slice %109 {offsets = [0, 32], sizes = [8, 32], strides = [1, 1]} : vector<8x128xf32> to vector<8x32xf32>
      %cst_89 = arith.constant 5.000000e-01 : f32
      %125 = vector.broadcast %cst_89 : f32 to vector<8x32xf32>
      %126 = arith.mulf %125, %124 : vector<8x32xf32>
      %127 = math.tanh %126 : vector<8x32xf32>
      %cst_90 = arith.constant 5.000000e-01 : f32
      %128 = vector.broadcast %cst_90 : f32 to vector<8x32xf32>
      %129 = arith.mulf %128, %127 : vector<8x32xf32>
      %cst_91 = arith.constant 5.000000e-01 : f32
      %130 = vector.broadcast %cst_91 : f32 to vector<8x32xf32>
      %131 = arith.addf %129, %130 : vector<8x32xf32>
      %132 = vector.extract_strided_slice %109 {offsets = [0, 64], sizes = [8, 32], strides = [1, 1]} : vector<8x128xf32> to vector<8x32xf32>
      %133 = math.tanh %132 : vector<8x32xf32>
      %134 = vector.extract_strided_slice %109 {offsets = [0, 96], sizes = [8, 32], strides = [1, 1]} : vector<8x128xf32> to vector<8x32xf32>
      %cst_92 = arith.constant 5.000000e-01 : f32
      %135 = vector.broadcast %cst_92 : f32 to vector<8x32xf32>
      %136 = arith.mulf %135, %134 : vector<8x32xf32>
      %137 = math.tanh %136 : vector<8x32xf32>
      %cst_93 = arith.constant 5.000000e-01 : f32
      %138 = vector.broadcast %cst_93 : f32 to vector<8x32xf32>
      %139 = arith.mulf %138, %137 : vector<8x32xf32>
      %cst_94 = arith.constant 5.000000e-01 : f32
      %140 = vector.broadcast %cst_94 : f32 to vector<8x32xf32>
      %141 = arith.addf %139, %140 : vector<8x32xf32>
      %142 = arith.mulf %131, %arg21 : vector<8x32xf32>
      %143 = arith.mulf %123, %133 : vector<8x32xf32>
      %144 = arith.addf %142, %143 : vector<8x32xf32>
      %145 = math.tanh %144 : vector<8x32xf32>
      %146 = arith.mulf %141, %145 : vector<8x32xf32>
      %147 = vector.extract_strided_slice %115 {offsets = [0, 0], sizes = [8, 32], strides = [1, 1]} : vector<8x128xf32> to vector<8x32xf32>
      %cst_95 = arith.constant 5.000000e-01 : f32
      %148 = vector.broadcast %cst_95 : f32 to vector<8x32xf32>
      %149 = arith.mulf %148, %147 : vector<8x32xf32>
      %150 = math.tanh %149 : vector<8x32xf32>
      %cst_96 = arith.constant 5.000000e-01 : f32
      %151 = vector.broadcast %cst_96 : f32 to vector<8x32xf32>
      %152 = arith.mulf %151, %150 : vector<8x32xf32>
      %cst_97 = arith.constant 5.000000e-01 : f32
      %153 = vector.broadcast %cst_97 : f32 to vector<8x32xf32>
      %154 = arith.addf %152, %153 : vector<8x32xf32>
      %155 = vector.extract_strided_slice %115 {offsets = [0, 32], sizes = [8, 32], strides = [1, 1]} : vector<8x128xf32> to vector<8x32xf32>
      %cst_98 = arith.constant 5.000000e-01 : f32
      %156 = vector.broadcast %cst_98 : f32 to vector<8x32xf32>
      %157 = arith.mulf %156, %155 : vector<8x32xf32>
      %158 = math.tanh %157 : vector<8x32xf32>
      %cst_99 = arith.constant 5.000000e-01 : f32
      %159 = vector.broadcast %cst_99 : f32 to vector<8x32xf32>
      %160 = arith.mulf %159, %158 : vector<8x32xf32>
      %cst_100 = arith.constant 5.000000e-01 : f32
      %161 = vector.broadcast %cst_100 : f32 to vector<8x32xf32>
      %162 = arith.addf %160, %161 : vector<8x32xf32>
      %163 = vector.extract_strided_slice %115 {offsets = [0, 64], sizes = [8, 32], strides = [1, 1]} : vector<8x128xf32> to vector<8x32xf32>
      %164 = math.tanh %163 : vector<8x32xf32>
      %165 = vector.extract_strided_slice %115 {offsets = [0, 96], sizes = [8, 32], strides = [1, 1]} : vector<8x128xf32> to vector<8x32xf32>
      %cst_101 = arith.constant 5.000000e-01 : f32
      %166 = vector.broadcast %cst_101 : f32 to vector<8x32xf32>
      %167 = arith.mulf %166, %165 : vector<8x32xf32>
      %168 = math.tanh %167 : vector<8x32xf32>
      %cst_102 = arith.constant 5.000000e-01 : f32
      %169 = vector.broadcast %cst_102 : f32 to vector<8x32xf32>
      %170 = arith.mulf %169, %168 : vector<8x32xf32>
      %cst_103 = arith.constant 5.000000e-01 : f32
      %171 = vector.broadcast %cst_103 : f32 to vector<8x32xf32>
      %172 = arith.addf %170, %171 : vector<8x32xf32>
      %173 = arith.mulf %162, %arg23 : vector<8x32xf32>
      %174 = arith.mulf %154, %164 : vector<8x32xf32>
      %175 = arith.addf %173, %174 : vector<8x32xf32>
      %176 = math.tanh %175 : vector<8x32xf32>
      %177 = arith.mulf %172, %176 : vector<8x32xf32>
      %178 = arith.index_cast %arg19 : i32 to index
      %c0_104 = arith.constant 0 : index
      %c0_105 = arith.constant 0 : index
      %179 = vector.load %arg16[%178, %c0_104, %c0_105] : memref<8x8x32xf32, #tpu.memory_space<vmem>>, vector<1x8x32xf32>
      %180 = vector.shape_cast %179 : vector<1x8x32xf32> to vector<8x32xf32>
      %181 = vector.shape_cast %146 : vector<8x32xf32> to vector<1x8x32xf32>
      tpu.vector_store %arg16[%178, %c0_104, %c0_105], %181 {strides = array<i32>} : memref<8x8x32xf32, #tpu.memory_space<vmem>>, vector<1x8x32xf32>,
      %182 = arith.index_cast %103 : i32 to index
      %c0_106 = arith.constant 0 : index
      %c0_107 = arith.constant 0 : index
      %183 = vector.load %arg17[%182, %c0_106, %c0_107] : memref<8x8x32xf32, #tpu.memory_space<vmem>>, vector<1x8x32xf32>
      %184 = vector.shape_cast %183 : vector<1x8x32xf32> to vector<8x32xf32>
      %185 = vector.shape_cast %177 : vector<8x32xf32> to vector<1x8x32xf32>
      tpu.vector_store %arg17[%182, %c0_106, %c0_107], %185 {strides = array<i32>} : memref<8x8x32xf32, #tpu.memory_space<vmem>>, vector<1x8x32xf32>,
      scf.yield %146, %144, %177, %175 : vector<8x32xf32>, vector<8x32xf32>, vector<8x32xf32>, vector<8x32xf32>
    }
    %c8_i32_47 = arith.constant 8 : i32
    %c0_48 = arith.constant 0 : index
    %c0_49 = arith.constant 0 : index
    %c0_50 = arith.constant 0 : index
    %56 = vector.load %arg16[%c0_48, %c0_49, %c0_50] : memref<8x8x32xf32, #tpu.memory_space<vmem>>, vector<8x8x32xf32>
    %57 = vector.shape_cast %56 : vector<8x8x32xf32> to vector<64x32xf32>
    %c0_51 = arith.constant 0 : index
    %c0_52 = arith.constant 0 : index
    %c0_53 = arith.constant 0 : index
    %58 = vector.load %arg17[%c0_51, %c0_52, %c0_53] : memref<8x8x32xf32, #tpu.memory_space<vmem>>, vector<8x8x32xf32>
    %59 = vector.shape_cast %58 : vector<8x8x32xf32> to vector<64x32xf32>
    %c0_54 = arith.constant 0 : index
    %c0_55 = arith.constant 0 : index
    %60 = vector.load %arg8[%c0_54, %c0_55] : memref<64x128xf32, #tpu.memory_space<vmem>>, vector<64x128xf32>
    %61 = vector.extract_strided_slice %60 {offsets = [0, 0], sizes = [32, 128], strides = [1, 1]} : vector<64x128xf32> to vector<32x128xf32>
    %62 = arith.truncf %57 : vector<64x32xf32> to vector<64x32xbf16>
    %63 = arith.truncf %61 : vector<32x128xf32> to vector<32x128xbf16>
    %cst_56 = arith.constant dense<0.000000e+00> : vector<64x128xf32>
    %64 = tpu.matmul %62, %63, %cst_56 {dimension_numbers = #tpu.dot_dimension_numbers<[1], [0], [0], [1], [0, 0, 1, 1], [], []>} : vector<64x32xbf16>, vector<32x128xbf16>, vector<64x128xf32> -> vector<64x128xf32>
    %65 = vector.extract_strided_slice %60 {offsets = [32, 0], sizes = [32, 128], strides = [1, 1]} : vector<64x128xf32> to vector<32x128xf32>
    %66 = arith.truncf %59 : vector<64x32xf32> to vector<64x32xbf16>
    %67 = arith.truncf %65 : vector<32x128xf32> to vector<32x128xbf16>
    %cst_57 = arith.constant dense<0.000000e+00> : vector<64x128xf32>
    %68 = tpu.matmul %66, %67, %cst_57 {dimension_numbers = #tpu.dot_dimension_numbers<[1], [0], [0], [1], [0, 0, 1, 1], [], []>} : vector<64x32xbf16>, vector<32x128xbf16>, vector<64x128xf32> -> vector<64x128xf32>
    %69 = arith.addf %64, %68 : vector<64x128xf32>
    %c0_58 = arith.constant 0 : index
    %c0_59 = arith.constant 0 : index
    %70 = vector.load %arg9[%c0_58, %c0_59] : memref<1x128xf32, #tpu.memory_space<vmem>>, vector<1x128xf32>
    %71 = vector.broadcast %70 : vector<1x128xf32> to vector<64x128xf32>
    %72 = arith.addf %69, %71 : vector<64x128xf32>
    %73 = vector.shape_cast %72 : vector<64x128xf32> to vector<8x8x128xf32>
    %c0_60 = arith.constant 0 : index
    %c0_61 = arith.constant 0 : index
    %c0_62 = arith.constant 0 : index
    %74 = vector.load %arg13[%c0_60, %c0_61, %c0_62] : memref<8x8x128xf32, #tpu.memory_space<vmem>>, vector<8x8x128xf32>
    tpu.vector_store %arg13[%c0_60, %c0_61, %c0_62], %73 {strides = array<i32>} : memref<8x8x128xf32, #tpu.memory_space<vmem>>, vector<8x8x128xf32>,
    %c0_63 = arith.constant 0 : index
    %c0_64 = arith.constant 0 : index
    %75 = vector.load %arg10[%c0_63, %c0_64] : memref<128x128xf32, #tpu.memory_space<vmem>>, vector<128x128xf32>
    %76 = vector.extract_strided_slice %75 {offsets = [0, 0], sizes = [1, 128], strides = [1, 1]} : vector<128x128xf32> to vector<1x128xf32>
    %77 = vector.extract_strided_slice %75 {offsets = [1, 0], sizes = [1, 128], strides = [1, 1]} : vector<128x128xf32> to vector<1x128xf32>
    %78 = vector.extract_strided_slice %75 {offsets = [2, 0], sizes = [1, 128], strides = [1, 1]} : vector<128x128xf32> to vector<1x128xf32>
    %79 = vector.extract_strided_slice %75 {offsets = [3, 0], sizes = [1, 128], strides = [1, 1]} : vector<128x128xf32> to vector<1x128xf32>
    %80 = vector.extract_strided_slice %75 {offsets = [4, 0], sizes = [1, 128], strides = [1, 1]} : vector<128x128xf32> to vector<1x128xf32>
    %81 = vector.extract_strided_slice %75 {offsets = [5, 0], sizes = [1, 128], strides = [1, 1]} : vector<128x128xf32> to vector<1x128xf32>
    %82 = tpu.iota {dimensions = array<i32: 1>} : vector<8x128xi32>
    %c4_i32 = arith.constant 4 : i32
    %83 = vector.broadcast %c4_i32 : i32 to vector<8x128xi32>
    %84 = arith.cmpi eq, %82, %83 : vector<8x128xi32>
    %cst_65 = arith.constant 0.000000e+00 : f32
    %cst_66 = arith.constant -1.000000e+04 : f32
    %85 = vector.broadcast %cst_65 : f32 to vector<8x128xf32>
    %86 = vector.broadcast %cst_66 : f32 to vector<8x128xf32>
    %87 = arith.select %84, %85, %86 : vector<8x128xi1>, vector<8x128xf32>
    %c1_i32_67 = arith.constant 1 : i32
    %c7_i32 = arith.constant 7 : i32
    %88 = arith.addi %c1_i32_67, %c7_i32 : i32
    %c1_i32_68 = arith.constant 1 : i32
    %89 = scf.for %arg19 = %c1_i32_67 to %88 step %c1_i32_68 iter_args(%arg20 = %87) -> (vector<8x128xf32>)  : i32 {
      %103 = vector.extract_strided_slice %arg20 {offsets = [0, 0], sizes = [8, 1], strides = [1, 1]} : vector<8x128xf32> to vector<8x1xf32>
      %104 = vector.broadcast %103 : vector<8x1xf32> to vector<8x128xf32>
      %105 = vector.broadcast %76 : vector<1x128xf32> to vector<8x128xf32>
      %106 = arith.addf %104, %105 : vector<8x128xf32>
      %c0_i32_79 = arith.constant 0 : i32
      %107 = vector.broadcast %c0_i32_79 : i32 to vector<8x128xi32>
      %108 = vector.extract_strided_slice %arg20 {offsets = [0, 1], sizes = [8, 1], strides = [1, 1]} : vector<8x128xf32> to vector<8x1xf32>
      %109 = vector.broadcast %108 : vector<8x1xf32> to vector<8x128xf32>
      %110 = vector.broadcast %77 : vector<1x128xf32> to vector<8x128xf32>
      %111 = arith.addf %109, %110 : vector<8x128xf32>
      %112 = arith.cmpf ogt, %111, %106 : vector<8x128xf32>
      %113 = arith.select %112, %111, %106 : vector<8x128xi1>, vector<8x128xf32>
      %c1_i32_80 = arith.constant 1 : i32
      %114 = vector.broadcast %c1_i32_80 : i32 to vector<8x128xi32>
      %115 = arith.select %112, %114, %107 : vector<8x128xi1>, vector<8x128xi32>
      %116 = vector.extract_strided_slice %arg20 {offsets = [0, 2], sizes = [8, 1], strides = [1, 1]} : vector<8x128xf32> to vector<8x1xf32>
      %117 = vector.broadcast %116 : vector<8x1xf32> to vector<8x128xf32>
      %118 = vector.broadcast %78 : vector<1x128xf32> to vector<8x128xf32>
      %119 = arith.addf %117, %118 : vector<8x128xf32>
      %120 = arith.cmpf ogt, %119, %113 : vector<8x128xf32>
      %121 = arith.select %120, %119, %113 : vector<8x128xi1>, vector<8x128xf32>
      %c2_i32 = arith.constant 2 : i32
      %122 = vector.broadcast %c2_i32 : i32 to vector<8x128xi32>
      %123 = arith.select %120, %122, %115 : vector<8x128xi1>, vector<8x128xi32>
      %124 = vector.extract_strided_slice %arg20 {offsets = [0, 3], sizes = [8, 1], strides = [1, 1]} : vector<8x128xf32> to vector<8x1xf32>
      %125 = vector.broadcast %124 : vector<8x1xf32> to vector<8x128xf32>
      %126 = vector.broadcast %79 : vector<1x128xf32> to vector<8x128xf32>
      %127 = arith.addf %125, %126 : vector<8x128xf32>
      %128 = arith.cmpf ogt, %127, %121 : vector<8x128xf32>
      %129 = arith.select %128, %127, %121 : vector<8x128xi1>, vector<8x128xf32>
      %c3_i32 = arith.constant 3 : i32
      %130 = vector.broadcast %c3_i32 : i32 to vector<8x128xi32>
      %131 = arith.select %128, %130, %123 : vector<8x128xi1>, vector<8x128xi32>
      %132 = vector.extract_strided_slice %arg20 {offsets = [0, 4], sizes = [8, 1], strides = [1, 1]} : vector<8x128xf32> to vector<8x1xf32>
      %133 = vector.broadcast %132 : vector<8x1xf32> to vector<8x128xf32>
      %134 = vector.broadcast %80 : vector<1x128xf32> to vector<8x128xf32>
      %135 = arith.addf %133, %134 : vector<8x128xf32>
      %136 = arith.cmpf ogt, %135, %129 : vector<8x128xf32>
      %137 = arith.select %136, %135, %129 : vector<8x128xi1>, vector<8x128xf32>
      %c4_i32_81 = arith.constant 4 : i32
      %138 = vector.broadcast %c4_i32_81 : i32 to vector<8x128xi32>
      %139 = arith.select %136, %138, %131 : vector<8x128xi1>, vector<8x128xi32>
      %140 = vector.extract_strided_slice %arg20 {offsets = [0, 5], sizes = [8, 1], strides = [1, 1]} : vector<8x128xf32> to vector<8x1xf32>
      %141 = vector.broadcast %140 : vector<8x1xf32> to vector<8x128xf32>
      %142 = vector.broadcast %81 : vector<1x128xf32> to vector<8x128xf32>
      %143 = arith.addf %141, %142 : vector<8x128xf32>
      %144 = arith.cmpf ogt, %143, %137 : vector<8x128xf32>
      %145 = arith.select %144, %143, %137 : vector<8x128xi1>, vector<8x128xf32>
      %c5_i32 = arith.constant 5 : i32
      %146 = vector.broadcast %c5_i32 : i32 to vector<8x128xi32>
      %147 = arith.select %144, %146, %139 : vector<8x128xi1>, vector<8x128xi32>
      %148 = arith.index_cast %arg19 : i32 to index
      %c0_82 = arith.constant 0 : index
      %c0_83 = arith.constant 0 : index
      %149 = vector.load %arg18[%148, %c0_82, %c0_83] : memref<8x8x128xi32, #tpu.memory_space<vmem>>, vector<1x8x128xi32>
      %150 = vector.shape_cast %149 : vector<1x8x128xi32> to vector<8x128xi32>
      %151 = vector.shape_cast %147 : vector<8x128xi32> to vector<1x8x128xi32>
      tpu.vector_store %arg18[%148, %c0_82, %c0_83], %151 {strides = array<i32>} : memref<8x8x128xi32, #tpu.memory_space<vmem>>, vector<1x8x128xi32>,
      %152 = arith.index_cast %arg19 : i32 to index
      %c0_84 = arith.constant 0 : index
      %c0_85 = arith.constant 0 : index
      %153 = vector.load %arg13[%152, %c0_84, %c0_85] : memref<8x8x128xf32, #tpu.memory_space<vmem>>, vector<1x8x128xf32>
      %154 = vector.shape_cast %153 : vector<1x8x128xf32> to vector<8x128xf32>
      %155 = arith.addf %145, %154 : vector<8x128xf32>
      scf.yield %155 : vector<8x128xf32>
    }
    %c7_i32_69 = arith.constant 7 : i32
    %cst_70 = arith.constant dense<0xFF800000> : vector<8xf32>
    %90 = vector.multi_reduction <maximumf>, %89, %cst_70 [1] : vector<8x128xf32> to vector<8xf32>
    %91 = vector.shape_cast %90 : vector<8xf32> to vector<8x1xf32>
    %c0_71 = arith.constant 0 : index
    %c0_72 = arith.constant 0 : index
    %92 = vector.load %arg11[%c0_71, %c0_72] : memref<8x1xf32, #tpu.memory_space<vmem>>, vector<8x1xf32>
    tpu.vector_store %arg11[%c0_71, %c0_72], %91 {strides = array<i32>} : memref<8x1xf32, #tpu.memory_space<vmem>>, vector<8x1xf32>,
    %93 = vector.broadcast %91 : vector<8x1xf32> to vector<8x128xf32>
    %94 = arith.cmpf oge, %89, %93 : vector<8x128xf32>
    %c128_i32 = arith.constant 128 : i32
    %95 = vector.broadcast %c128_i32 : i32 to vector<8x128xi32>
    %96 = arith.select %94, %82, %95 : vector<8x128xi1>, vector<8x128xi32>
    %cst_73 = arith.constant dense<2147483647> : vector<8xi32>
    %97 = vector.multi_reduction <minsi>, %96, %cst_73 [1] : vector<8x128xi32> to vector<8xi32>
    %c7 = arith.constant 7 : index
    %c0_74 = arith.constant 0 : index
    %98 = vector.load %arg12[%c7, %c0_74] : memref<8x8xi32, #tpu.memory_space<vmem>>, vector<1x8xi32>
    %99 = vector.shape_cast %98 : vector<1x8xi32> to vector<8xi32>
    %100 = vector.shape_cast %97 : vector<8xi32> to vector<1x8xi32>
    tpu.vector_store %arg12[%c7, %c0_74], %100 {strides = array<i32>} : memref<8x8xi32, #tpu.memory_space<vmem>>, vector<1x8xi32>,
    %c0_i32_75 = arith.constant 0 : i32
    %c7_i32_76 = arith.constant 7 : i32
    %101 = arith.addi %c0_i32_75, %c7_i32_76 : i32
    %c1_i32_77 = arith.constant 1 : i32
    %102 = scf.for %arg19 = %c0_i32_75 to %101 step %c1_i32_77 iter_args(%arg20 = %97) -> (vector<8xi32>)  : i32 {
      %c6_i32 = arith.constant 6 : i32
      %103 = arith.subi %c6_i32, %arg19 : i32
      %104 = vector.shape_cast %arg20 : vector<8xi32> to vector<8x1xi32>
      %105 = vector.broadcast %104 : vector<8x1xi32> to vector<8x128xi32>
      %106 = arith.cmpi eq, %82, %105 : vector<8x128xi32>
      %c1_i32_79 = arith.constant 1 : i32
      %107 = arith.addi %103, %c1_i32_79 : i32
      %108 = arith.index_cast %107 : i32 to index
      %c0_80 = arith.constant 0 : index
      %c0_81 = arith.constant 0 : index
      %109 = vector.load %arg18[%108, %c0_80, %c0_81] : memref<8x8x128xi32, #tpu.memory_space<vmem>>, vector<1x8x128xi32>
      %110 = vector.shape_cast %109 : vector<1x8x128xi32> to vector<8x128xi32>
      %c0_i32_82 = arith.constant 0 : i32
      %111 = vector.broadcast %c0_i32_82 : i32 to vector<8x128xi32>
      %112 = arith.select %106, %110, %111 : vector<8x128xi1>, vector<8x128xi32>
      %cst_83 = arith.constant dense<0> : vector<8xi32>
      %113 = vector.multi_reduction <add>, %112, %cst_83 [1] : vector<8x128xi32> to vector<8xi32>
      %114 = arith.index_cast %103 : i32 to index
      %c0_84 = arith.constant 0 : index
      %115 = vector.load %arg12[%114, %c0_84] : memref<8x8xi32, #tpu.memory_space<vmem>>, vector<1x8xi32>
      %116 = vector.shape_cast %115 : vector<1x8xi32> to vector<8xi32>
      %117 = vector.shape_cast %113 : vector<8xi32> to vector<1x8xi32>
      tpu.vector_store %arg12[%114, %c0_84], %117 {strides = array<i32>} : memref<8x8xi32, #tpu.memory_space<vmem>>, vector<1x8xi32>,
      scf.yield %113 : vector<8xi32>
    }
    %c7_i32_78 = arith.constant 7 : i32
    return
  }
  func.func @transform_0(%arg0: i32) -> (i32, i32, i32) {
    %c0_i32 = arith.constant 0 : i32
    %c0_i32_0 = arith.constant 0 : i32
    %c0_i32_1 = arith.constant 0 : i32
    return %c0_i32, %arg0, %c0_i32_0 : i32, i32, i32
  }
  func.func @transform_1(%arg0: i32) -> (i32, i32) {
    %c0_i32 = arith.constant 0 : i32
    %c0_i32_0 = arith.constant 0 : i32
    %c0_i32_1 = arith.constant 0 : i32
    return %c0_i32, %c0_i32_0 : i32, i32
  }
  func.func @transform_2(%arg0: i32) -> (i32, i32, i32) {
    %c0_i32 = arith.constant 0 : i32
    %c0_i32_0 = arith.constant 0 : i32
    %c0_i32_1 = arith.constant 0 : i32
    %c0_i32_2 = arith.constant 0 : i32
    return %c0_i32, %c0_i32_0, %c0_i32_1 : i32, i32, i32
  }
  func.func @transform_3(%arg0: i32) -> (i32, i32) {
    %c0_i32 = arith.constant 0 : i32
    %c0_i32_0 = arith.constant 0 : i32
    %c0_i32_1 = arith.constant 0 : i32
    return %c0_i32, %c0_i32_0 : i32, i32
  }
  func.func @transform_4(%arg0: i32) -> (i32, i32) {
    %c0_i32 = arith.constant 0 : i32
    %c0_i32_0 = arith.constant 0 : i32
    %c0_i32_1 = arith.constant 0 : i32
    return %c0_i32, %c0_i32_0 : i32, i32
  }
  func.func @transform_5(%arg0: i32) -> (i32, i32, i32) {
    %c0_i32 = arith.constant 0 : i32
    %c0_i32_0 = arith.constant 0 : i32
    %c0_i32_1 = arith.constant 0 : i32
    %c0_i32_2 = arith.constant 0 : i32
    return %c0_i32, %c0_i32_0, %c0_i32_1 : i32, i32, i32
  }
  func.func @transform_6(%arg0: i32) -> (i32, i32) {
    %c0_i32 = arith.constant 0 : i32
    %c0_i32_0 = arith.constant 0 : i32
    %c0_i32_1 = arith.constant 0 : i32
    return %c0_i32, %c0_i32_0 : i32, i32
  }
  func.func @transform_7(%arg0: i32) -> (i32, i32) {
    %c0_i32 = arith.constant 0 : i32
    %c0_i32_0 = arith.constant 0 : i32
    %c0_i32_1 = arith.constant 0 : i32
    return %c0_i32, %c0_i32_0 : i32, i32
  }
  func.func @transform_8(%arg0: i32) -> (i32, i32) {
    %c0_i32 = arith.constant 0 : i32
    %c0_i32_0 = arith.constant 0 : i32
    %c0_i32_1 = arith.constant 0 : i32
    return %c0_i32, %c0_i32_0 : i32, i32
  }
  func.func @transform_9(%arg0: i32) -> (i32, i32) {
    %c0_i32 = arith.constant 0 : i32
    %c0_i32_0 = arith.constant 0 : i32
    %c0_i32_1 = arith.constant 0 : i32
    return %c0_i32, %c0_i32_0 : i32, i32
  }
  func.func @transform_10(%arg0: i32) -> (i32, i32) {
    %c0_i32 = arith.constant 0 : i32
    %c0_i32_0 = arith.constant 0 : i32
    return %arg0, %c0_i32 : i32, i32
  }
  func.func @transform_11(%arg0: i32) -> (i32, i32) {
    %c0_i32 = arith.constant 0 : i32
    %c0_i32_0 = arith.constant 0 : i32
    return %c0_i32, %arg0 : i32, i32
  }
  func.func @transform_12(%arg0: i32) -> (i32, i32, i32) {
    %c0_i32 = arith.constant 0 : i32
    %c0_i32_0 = arith.constant 0 : i32
    %c0_i32_1 = arith.constant 0 : i32
    return %c0_i32, %arg0, %c0_i32_0 : i32, i32, i32
  }
}

</mosaic_0001>

<bundles_post_ra>
// kernel: _forward_impl.1
= control target key start
LH: loop header
LB: loop body
LE: loop exit
PB: predicated region body
PF: predicated region fallthrough
CT: control target
= control target key end

     0   :  { %v1682_v3 = vmov 0   ;;  %vm87_vm0 = vcmask 523264   ;;  %v77_v49 = vlaneseq  ;;  %s2295_s1 = inlined_call_operand.vmem [shape: f32[64,256], index: 1, kind: input, shape index: {}]   ;;  %s2296_s4 = inlined_call_operand.vmem [shape: f32[64,256], index: 4, kind: input, shape index: {}]   ;;  %s2297_s5 = inlined_call_operand.vmem [shape: f32[2,32,128], index: 5, kind: input, shape index: {}]   ;;  %s2298_s6 = inlined_call_operand.vmem [shape: f32[1,256], index: 6, kind: input, shape index: {}]   ;;  %s2299_s7 = inlined_call_operand.vmem [shape: f32[64,128], index: 7, kind: input, shape index: {}]   ;;  %s2300_s8 = inlined_call_operand.vmem [shape: f32[1,128], index: 8, kind: input, shape index: {}]   ;;  %s2301_s9 = inlined_call_operand.vmem [shape: f32[128,128], index: 9, kind: input, shape index: {}]   ;;  %s2302_s10 = inlined_call_operand.vmem [shape: f32[8,1], index: 10, kind: output, shape index: {0}]   ;;  %s2303_s11 = inlined_call_operand.vmem [shape: s32[8,8], index: 11, kind: output, shape index: {1}]   ;;  %s2304_s12 = inlined_call_operand.vmem [shape: f32[8,8,128], index: 12, kind: output, shape index: {2}]   ;;  %s2305_s0 = inlined_call_operand.vmem [shape: f32[8,8,64], index: 0, kind: input, shape index: {}]   ;;  %s2306_s2 = inlined_call_operand.vmem [shape: f32[2,32,128], index: 2, kind: input, shape index: {}]   ;;  %s2307_s3 = inlined_call_operand.vmem [shape: f32[1,256], index: 3, kind: input, shape index: {}]  }
   0x1   :  { %v48_v0 = vld [vmem:[%s2295_s1 + $0x8] sm:$0xff]  ;;  %v50_v1 = vld [vmem:[%s2295_s1 + $0x18] sm:$0xff]  ;;  %v47_v2 = vld [vmem:[%s2295_s1] sm:$0xff]  ;;  %132 = vmatprep.mubr.bf16.mxu0 %v1682_v3  ;;  %152 = vmatprep.mubr.bf16.mxu1 %v1682_v3 }
   0x2   :  { %v68_v4 = vpack.c.bf16 %v50_v1, %v48_v0  ;;  %v49_v5 = vld [vmem:[%s2295_s1 + $0x10] sm:$0xff]  ;;  %v52_v6 = vld [vmem:[%s2295_s1 + $0x28] sm:$0xff]  ;;  %v54_v7 = vld [vmem:[%s2295_s1 + $0x38] sm:$0xff]  ;;  %v1888_v50 = vshrl.u32 %v77_v49, 7 }
   0x3   :  { %v67_v8 = vpack.c.bf16 %v49_v5, %v47_v2  ;;  %v70_v9 = vpack.c.bf16 %v54_v7, %v52_v6  ;;  %v51_v10 = vld [vmem:[%s2295_s1 + $0x20] sm:$0xff]  ;;  %v53_v11 = vld [vmem:[%s2295_s1 + $0x30] sm:$0xff]  ;;  %v56_v12 = vld [vmem:[%s2295_s1 + $0x48] sm:$0xff] }
   0x4   :  { %100 = vmatprep.subr.bf16.mxu0 %v68_v4  ;;  %1380 = vmatprep.subr.bf16.mxu1 %v68_v4  ;;  %v58_v13 = vld [vmem:[%s2295_s1 + $0x58] sm:$0xff]  ;;  %v69_v14 = vpack.c.bf16 %v53_v11, %v51_v10  ;;  %v55_v16 = vld [vmem:[%s2295_s1 + $0x40] sm:$0xff]  ;;  %v57_v17 = vld [vmem:[%s2295_s1 + $0x50] sm:$0xff]  ;;  %v1891_v51 = vsub.s32 0, %v1888_v50  ;;  %v1897_v53 = vsub.s32 1, %v1888_v50 }
   0x5   :  { %101 = vmatpush1.bf16.msra.mxu0 %v67_v8  ;;  %1384 = vmatpush1.bf16.msra.mxu1 %v67_v8  ;;  %v72_v15 = vpack.c.bf16 %v58_v13, %v56_v12  ;;  %v60_v18 = vld [vmem:[%s2295_s1 + $0x68] sm:$0xff]  ;;  %v62_v19 = vld [vmem:[%s2295_s1 + $0x78] sm:$0xff]  ;;  %v71_v20 = vpack.c.bf16 %v57_v17, %v55_v16  ;;  %v59_v22 = vld [vmem:[%s2295_s1 + $0x60] sm:$0xff] }
   0x6   :  { %102 = vmatprep.subr.bf16.mxu0 %v70_v9  ;;  %1381 = vmatprep.subr.bf16.mxu1 %v70_v9  ;;  %v74_v21 = vpack.c.bf16 %v62_v19, %v60_v18  ;;  %v61_v23 = vld [vmem:[%s2295_s1 + $0x70] sm:$0xff]  ;;  %v39_v24 = vld [vmem:[%s2305_s0] sm:$0xff]  ;;  %v40_v26 = vld [vmem:[%s2305_s0 + $0x8] sm:$0xff] }
   0x7   :  { %v73_v25 = vpack.c.bf16 %v61_v23, %v59_v22  ;;  %v43_v27 = vld [vmem:[%s2305_s0 + $0x20] sm:$0xff]  ;;  %v44_v28 = vld [vmem:[%s2305_s0 + $0x28] sm:$0xff]  ;;  %v63_v29 = vpack.c.bf16 %v40_v26, %v39_v24  ;;  %v41_v31 = vld [vmem:[%s2305_s0 + $0x10] sm:$0xff]  ;;  %v1903_v26 = vmov 0.0  }
   0x8   :  { %v65_v30 = vpack.c.bf16 %v44_v28, %v43_v27  ;;  %v42_v32 = vld [vmem:[%s2305_s0 + $0x18] sm:$0xff]  ;;  %v45_v33 = vld [vmem:[%s2305_s0 + $0x30] sm:$0xff]  ;;  %v1842_v37 = vld [vmem:[%s2306_s2] sm:$0xff]  ;;  %v1905_v27 = vmov 0.0   ;;  %v1907_v28 = vmov 0.0  }
   0x9   :  { %103 = vmatpush1.bf16.msra.mxu0 %v69_v14  ;;  %1385 = vmatpush1.bf16.msra.mxu1 %v69_v14  ;;  %v46_v34 = vld [vmem:[%s2305_s0 + $0x38] sm:$0xff]  ;;  %v64_v35 = vpack.c.bf16 %v42_v32, %v41_v31  ;;  %v1847_v38 = vld [vmem:[%s2306_s2 + $0x8] sm:$0xff]  ;;  %v1852_v39 = vld [vmem:[%s2306_s2 + $0x10] sm:$0xff] }
   0xa   :  { %104 = vmatprep.subr.bf16.mxu0 %v72_v15  ;;  %1382 = vmatprep.subr.bf16.mxu1 %v72_v15  ;;  %v66_v36 = vpack.c.bf16 %v46_v34, %v45_v33  ;;  %v1857_v40 = vld [vmem:[%s2306_s2 + $0x18] sm:$0xff]  ;;  %v193_v41 = vpack.c.bf16 %v1847_v38, %v1842_v37  ;;  %v1864_v42 = vld [vmem:[%s2306_s2 + $0x20] sm:$0xff]  ;;  %v1869_v43 = vld [vmem:[%s2306_s2 + $0x28] sm:$0xff] }
   0xb   :  { %v194_v44 = vpack.c.bf16 %v1857_v40, %v1852_v39  ;;  %v1876_v45 = vld [vmem:[%s2306_s2 + $0x30] sm:$0xff]  ;;  %v1881_v46 = vld [vmem:[%s2306_s2 + $0x38] sm:$0xff]  ;;  %v200_v47 = vpack.c.bf16 %v1869_v43, %v1864_v42  ;;  %v75_v52 = vld [vmem:[%s2307_s3] sm:$0x3]  ;;  %s1909_s2 = smov 0  }
   0xc   :  { %v201_v48 = vpack.c.bf16 %v1881_v46, %v1876_v45  ;;  %v80_v54 = vrot.slane %v75_v52, %v1891_v51  ;;  %v84_v55 = vrot.slane %v75_v52, %v1897_v53 }
   0xd   :  { %105 = vmatpush1.bf16.msra.mxu0 %v71_v20  ;;  %1386 = vmatpush1.bf16.msra.mxu1 %v71_v20 }
   0xe   :  { %106 = vmatprep.subr.bf16.mxu0 %v74_v21  ;;  %1383 = vmatprep.subr.bf16.mxu1 %v74_v21 }
  0x11   :  { %107 = vmatpush1.bf16.msra.mxu0 %v73_v25  ;;  %1387 = vmatpush1.bf16.msra.mxu1 %v73_v25  ;;  %v1901_v25 = vmov 0.0  }
  0x14   :  { %1261 = vmatmul.mubr.msk.bf16.vlgmr.msra.gmra.mrb[0].mxu0 %vm87_vm0, %v63_v29  ;;  %1263 = vmatmul.mubr.msk.bf16.vlgmr.msra.gmra.mrb[0].mxu1 %vm87_vm0, %v65_v30 }
  0x15   :  { %142 = vmatprep.mubr.bf16.mxu0 %v1682_v3  ;;  %162 = vmatprep.mubr.bf16.mxu1 %v1682_v3 }
  0x1c   :  { %1262 = vmatmul.mubr.msk.bf16.gmra.mrb[4].mxu0 %vm87_vm0, %v64_v35  ;;  %1264 = vmatmul.mubr.msk.bf16.gmra.mrb[4].mxu1 %vm87_vm0, %v66_v36 }
  0xe7   :  { %v134_v56 = vpop.f32.mrb[0].mxu0  ;;  %v154_v57 = vpop.f32.mrb[0].mxu1 }
  0xe8   :  { %v135_v58 = vadd.f32 %v134_v56, %v80_v54  ;;  %v155_v59 = vadd.f32 %v154_v57, %v80_v54  ;;  %v136_v60 = vpop.f32.mrb[1].mxu0  ;;  %v156_v61 = vpop.f32.mrb[1].mxu1 }
  0xe9   :  { %v137_v62 = vadd.f32 %v136_v60, %v84_v55  ;;  %v157_v63 = vadd.f32 %v156_v61, %v84_v55  ;;  %v138_v0 = vpop.f32.mrb[2].mxu0  ;;  %v158_v1 = vpop.f32.mrb[2].mxu1 }
  0xea   :  { %173 = vst [vmem:[#allocation2] sm:$0xff] %v135_v58  ;;  %177 = vst [vmem:[#allocation2 + $0x20] sm:$0xff] %v155_v59  ;;  %v139_v2 = vadd.f32 %v138_v0, %v80_v54  ;;  %v159_v4 = vadd.f32 %v158_v1, %v80_v54  ;;  %v140_v5 = vpop.f32.mrb[3].mxu0  ;;  %v160_v6 = vpop.f32.mrb[3].mxu1 }
  0xeb   :  { %181 = vst [vmem:[#allocation3] sm:$0xff] %v137_v62  ;;  %185 = vst [vmem:[#allocation3 + $0x20] sm:$0xff] %v157_v63  ;;  %v141_v7 = vadd.f32 %v140_v5, %v84_v55  ;;  %v161_v8 = vadd.f32 %v160_v6, %v84_v55 }
  0xec   :  { %174 = vst [vmem:[#allocation2 + $0x8] sm:$0xff] %v139_v2  ;;  %178 = vst [vmem:[#allocation2 + $0x28] sm:$0xff] %v159_v4 }
  0xed   :  { %182 = vst [vmem:[#allocation3 + $0x8] sm:$0xff] %v141_v7  ;;  %186 = vst [vmem:[#allocation3 + $0x28] sm:$0xff] %v161_v8 }
  0xef   :  { %v144_v9 = vpop.f32.mrb[4].mxu0  ;;  %v164_v10 = vpop.f32.mrb[4].mxu1 }
  0xf0   :  { %v145_v11 = vadd.f32 %v144_v9, %v80_v54  ;;  %v165_v12 = vadd.f32 %v164_v10, %v80_v54  ;;  %v146_v13 = vpop.f32.mrb[5].mxu0  ;;  %v166_v14 = vpop.f32.mrb[5].mxu1 }
  0xf1   :  { %v147_v15 = vadd.f32 %v146_v13, %v84_v55  ;;  %v167_v16 = vadd.f32 %v166_v14, %v84_v55  ;;  %v148_v17 = vpop.f32.mrb[6].mxu0  ;;  %v168_v18 = vpop.f32.mrb[6].mxu1 }
  0xf2   :  { %175 = vst [vmem:[#allocation2 + $0x10] sm:$0xff] %v145_v11  ;;  %179 = vst [vmem:[#allocation2 + $0x30] sm:$0xff] %v165_v12  ;;  %v149_v19 = vadd.f32 %v148_v17, %v80_v54  ;;  %v169_v20 = vadd.f32 %v168_v18, %v80_v54  ;;  %v150_v21 = vpop.f32.mrb[7].mxu0  ;;  %v170_v22 = vpop.f32.mrb[7].mxu1 }
  0xf3   :  { %183 = vst [vmem:[#allocation3 + $0x10] sm:$0xff] %v147_v15  ;;  %187 = vst [vmem:[#allocation3 + $0x30] sm:$0xff] %v167_v16  ;;  %v151_v23 = vadd.f32 %v150_v21, %v84_v55  ;;  %v171_v24 = vadd.f32 %v170_v22, %v84_v55 }
  0xf4   :  { %176 = vst [vmem:[#allocation2 + $0x18] sm:$0xff] %v149_v19  ;;  %180 = vst [vmem:[#allocation2 + $0x38] sm:$0xff] %v169_v20 }
  0xf5   :  { %184 = vst [vmem:[#allocation3 + $0x18] sm:$0xff] %v151_v23  ;;  %188 = vst [vmem:[#allocation3 + $0x38] sm:$0xff] %v171_v24 }
  0xf6 LB: > { %v1683_v29 = vmov 0.0   ;;  %v216_v30 = vpack.c.bf16 %v1640_v28, %v1640_v28  ;;  %vm1684_vm1 = vmmov 0   ;;  %s1685_s3 = smov 32   ;;  %v268_v31 = vpack.c.bf16 %v1632_v26, %v1632_v26  ;;  %s1269_s30 = sshll.u32 %s1644_s2, 3  ;;  %s1644_s2 = sphi %s1909_s2, %s207_s2   ;;  %v1640_v28 = vphi %v1907_v28, %v337_v28   ;;  %v1636_v27 = vphi %v1905_v27, %v331_v27   ;;  %v1632_v26 = vphi %v1903_v26, %v359_v26   ;;  %v1628_v25 = vphi %v1901_v25, %v353_v25  }
  0xf7   : > { %1324 = vmatprep.subr.bf16.mxu0 %v1683_v29  ;;  %1332 = vmatprep.subr.bf16.mxu1 %v1683_v29  ;;  %vm220_vm2 = vcmask 261120   ;;  %s212_s13 = ssub.s32 7, %s1644_s2  ;;  %s214_s15 = scalar_lea.vmem [#allocation2], %s1269_s30 }
  0xf8   : > { %1325 = vmatpush3.bf16.msra.mxu0 %v193_v41  ;;  %1333 = vmatpush3.bf16.msra.mxu1 %v200_v47  ;;  %s1940_s14 = sshll.u32 %s212_s13, 3  ;;  %s1686_s17 = smov 64  }
  0xf9   : > { %1326 = vmatprep.subr.bf16.mxu0 %v1683_v29  ;;  %1328 = vmatprep.mubr.msk.bf16.mxu0 %vm1684_vm1, %v1683_v29  ;;  %s266_s16 = scalar_lea.vmem [#allocation3], %s1940_s14  ;;  %s364_s18 = scalar_lea.vmem [#allocation4], %s1269_s30 }
  0xfa   : > { %218 = vrot.lane.b32.xlu0 %v216_v30, %s1685_s3  ;;  %1334 = vmatprep.subr.bf16.mxu1 %v1683_v29  ;;  %s370_s19 = scalar_lea.vmem [#allocation5], %s1940_s14  ;;  %s207_s2 = sadd.s32 1, %s1644_s2  }
  0xfb   : > { %1336 = vmatprep.mubr.msk.bf16.mxu1 %vm1684_vm1, %v1683_v29  ;;  %v215_v34 = vld [vmem:[%s214_s15] sm:$0xff]  ;;  %p204_p0 = scmp.ge.s32.totalorder %s207_s2, 8  }
  0xfc   : > { %1327 = vmatpush3.bf16.msra.mxu0 %v194_v44  ;;  %1335 = vmatpush3.bf16.msra.mxu1 %v201_v48  ;;  %v267_v55 = vld [vmem:[%s266_s16] sm:$0xff]  ;;  %v397_v23 = vld [vmem:[%s2296_s4 + $0x48] sm:$0xff] (%p204_p0)  ;;  %v399_v24 = vld [vmem:[%s2296_s4 + $0x58] sm:$0xff] (%p204_p0) }
  0xfd   :  { %v389_v29 = vld [vmem:[%s2296_s4 + $0x8] sm:$0xff] (%p204_p0)  ;;  %v391_v37 = vld [vmem:[%s2296_s4 + $0x18] sm:$0xff] (%p204_p0)  ;;  %v396_v38 = vld [vmem:[%s2296_s4 + $0x40] sm:$0xff] (%p204_p0) }
  0xfe   : > { %270 = vrot.lane.b32.xlu0 %v268_v31, %s1685_s3  ;;  %v398_v39 = vld [vmem:[%s2296_s4 + $0x50] sm:$0xff] (%p204_p0)  ;;  %v409_v40 = vpack.c.bf16 (%p204_p0), %v391_v37, %v389_v29  ;;  %v388_v42 = vld [vmem:[%s2296_s4] sm:$0xff] (%p204_p0)  ;;  %v401_v44 = vld [vmem:[%s2296_s4 + $0x68] sm:$0xff] (%p204_p0) }
  0xff   :  { %v416_v41 = vpack.c.bf16 (%p204_p0), %v398_v39, %v396_v38  ;;  %v390_v43 = vld [vmem:[%s2296_s4 + $0x10] sm:$0xff] (%p204_p0)  ;;  %v403_v46 = vld [vmem:[%s2296_s4 + $0x78] sm:$0xff] (%p204_p0)  ;;  %v393_v47 = vld [vmem:[%s2296_s4 + $0x28] sm:$0xff] (%p204_p0) }
 0x100   :  { %v408_v45 = vpack.c.bf16 (%p204_p0), %v390_v43, %v388_v42  ;;  %v395_v48 = vld [vmem:[%s2296_s4 + $0x38] sm:$0xff] (%p204_p0)  ;;  %518 = vmatprep.subr.bf16.mxu0 (%p204_p0), %v409_v40  ;;  %v402_v30 = vld [vmem:[%s2296_s4 + $0x70] sm:$0xff] (%p204_p0)  ;;  %v392_v31 = vld [vmem:[%s2296_s4 + $0x20] sm:$0xff] (%p204_p0) }
 0x16c   : > { %v219_v32 = vpop.permute.xlu0 %218 }
 0x16d   : > { %1329 = vmatmul.mubr.msk.bf16.vlgmr.msra.gmra.mrb[0].mxu0 %vm220_vm2, %v219_v32 }
 0x16e   :  { %550 = vmatprep.mubr.bf16.mxu0 (%p204_p0), %v1682_v3  ;;  %519 = vmatpush1.bf16.msra.mxu0 (%p204_p0), %v408_v45 }
 0x170   : > { %v271_v33 = vpop.permute.xlu0 %270 }
 0x171   : > { %1337 = vmatmul.mubr.msk.bf16.vlgmr.msra.gmra.mrb[0].mxu1 %vm220_vm2, %v271_v33  ;;  %v394_v33 = vld [vmem:[%s2296_s4 + $0x30] sm:$0xff] (%p204_p0) }
 0x172   :  { %465 = vmatprep.mubr.bf16.mxu1 (%p204_p0), %v1682_v3 }
 0x240   : > { %v258_v35 = vpop.f32.mrb[0].mxu0 }
 0x241   : > { %v264_v36 = vadd.f32 %v258_v35, %v215_v34  ;;  %v1330_v52 = vpop.f32.mrb[1].mxu0 }
 0x242   : > { %v261_v54 = vpop.f32.mrb[2].mxu0 }
 0x243   : > { %1540 = vtanh.f32 %v264_v36  ;;  %v1331_v56 = vpop.f32.mrb[3].mxu0  ;;  %v316_v0 = vmul.f32 0.5, %v264_v36  ;;  %v410_v36 = vpack.c.bf16 (%p204_p0), %v394_v33, %v392_v31 }
 0x244   : > { %v309_v57 = vpop.f32.mrb[0].mxu1 }
 0x245   : > { %v315_v58 = vadd.f32 %v309_v57, %v267_v55  ;;  %v1338_v59 = vpop.f32.mrb[1].mxu1 }
 0x246   : > { %v312_v60 = vpop.f32.mrb[2].mxu1 }
 0x247   : > { %1542 = vtanh.f32 %v315_v58  ;;  %v1339_v61 = vpop.f32.mrb[3].mxu1  ;;  %v338_v1 = vmul.f32 0.5, %v315_v58 }
 0x248   : > { %1544 = vtanh.f32 %v316_v0 }
 0x249   : > { %1546 = vtanh.f32 %v338_v1 }
 0x24d   : > { %v1541_v62 = vpop.eup %1540 }
 0x24e   : > { %323 = vrot.lane.b32.xlu1 %v1541_v62, %s1686_s17 }
 0x251   : > { %v1543_v63 = vpop.eup %1542 }
 0x252   : > { %345 = vrot.lane.b32.xlu1 %v1543_v63, %s1686_s17  ;;  %v1545_v2 = vpop.eup %1544 }
 0x253   : > { %v318_v4 = vmul.f32 0.5, %v1545_v2  ;;  %v1547_v5 = vpop.eup %1546 }
 0x254   : > { %v340_v7 = vmul.f32 0.5, %v1547_v5 }
 0x255   : > { %v319_v6 = vadd.f32 0.5, %v318_v4 }
 0x256   : > { %v341_v10 = vadd.f32 0.5, %v340_v7 }
 0x257   : > { %v321_v13 = vmul.f32 %v1636_v27, %v319_v6 }
 0x258   : > { %v343_v15 = vmul.f32 %v1628_v25, %v341_v10 }
 0x2c0   : > { %v324_v8 = vpop.permute.xlu1 %323 }
 0x2c1   : > { %v326_v9 = vmul.f32 %v324_v8, %v319_v6 }
 0x2c3   : > { %328 = vrot.lane.b32.xlu0 %v326_v9, %s1685_s3 }
 0x2c4   : > { %v346_v11 = vpop.permute.xlu1 %345 }
 0x2c5   : > { %v348_v12 = vmul.f32 %v346_v11, %v341_v10 }
 0x2c7   : > { %350 = vrot.lane.b32.xlu1 %v348_v12, %s1685_s3  ;;  %v2038_v12 = vld [vmem:[%s2297_s5] sm:$0xff] (%p204_p0) }
 0x335   : > { %v329_v14 = vpop.permute.xlu0 %328 }
 0x336   : > { %v331_v27 = vadd.f32 %v329_v14, %v321_v13   ;;  %v2043_v13 = vld [vmem:[%s2297_s5 + $0x8] sm:$0xff] (%p204_p0)  ;;  %v2053_v14 = vld [vmem:[%s2297_s5 + $0x18] sm:$0xff] (%p204_p0) }
 0x338   : > { %1548 = vtanh.f32 %v331_v27  ;;  %v400_v27 = vld [vmem:[%s2296_s4 + $0x60] sm:$0xff] (%p204_p0) }
 0x339   : > { %v351_v16 = vpop.permute.xlu1 %350  ;;  %v418_v32 = vpack.c.bf16 (%p204_p0), %v402_v30, %v400_v27 }
 0x33a   : > { %v353_v25 = vadd.f32 %v351_v16, %v343_v15   ;;  %v639_v15 = vpack.c.bf16 (%p204_p0), %v2043_v13, %v2038_v12  ;;  %v2060_v16 = vld [vmem:[%s2297_s5 + $0x20] sm:$0xff] (%p204_p0) }
 0x33c   : > { %1550 = vtanh.f32 %v353_v25  ;;  %v419_v25 = vpack.c.bf16 (%p204_p0), %v403_v46, %v401_v44 }
 0x342   : > { %v1549_v17 = vpop.eup %1548 }
 0x343   : > { %334 = vrot.lane.b32.xlu0 %v1549_v17, %s1686_s17  ;;  %v2065_v17 = vld [vmem:[%s2297_s5 + $0x28] sm:$0xff] (%p204_p0) }
 0x346   : > { %v1551_v18 = vpop.eup %1550 }
 0x347   : > { %356 = vrot.lane.b32.xlu1 %v1551_v18, %s1686_s17 }
 0x3b5   : > { %v335_v19 = vpop.permute.xlu0 %334 }
 0x3b6   : > { %v337_v28 = vmul.f32 %v335_v19, %v319_v6   ;;  %v2072_v19 = vld [vmem:[%s2297_s5 + $0x30] sm:$0xff] (%p204_p0) }
 0x3b8   : > { %361 = vrot.lane.b32.xlu0 %v337_v28, %s1685_s3  ;;  %v417_v28 = vpack.c.bf16 (%p204_p0), %v399_v24, %v397_v23  ;;  %v591_v23 = vld [vmem:[%s2298_s6] sm:$0x3] (%p204_p0) }
 0x3b9   : > { %v357_v20 = vpop.permute.xlu1 %356  ;;  %v2087_v29 = vrot.slane (%p204_p0), %v591_v23, %v1891_v51  ;;  %v2090_v38 = vrot.slane (%p204_p0), %v591_v23, %v1897_v53 }
 0x3ba   : > { %v359_v26 = vmul.f32 %v357_v20, %v341_v10   ;;  %433 = vmatprep.subr.bf16.mxu1 (%p204_p0), %v417_v28  ;;  %v2077_v20 = vld [vmem:[%s2297_s5 + $0x38] sm:$0xff] (%p204_p0) }
 0x3bb   :  { %434 = vmatpush1.bf16.msra.mxu1 (%p204_p0), %v416_v41 }
 0x3bc   : > { %367 = vrot.lane.b32.xlu1 %v359_v26, %s1685_s3  ;;  %v411_v26 = vpack.c.bf16 (%p204_p0), %v395_v48, %v393_v47  ;;  %435 = vmatprep.subr.bf16.mxu1 (%p204_p0), %v419_v25 }
 0x3be   :  { %520 = vmatprep.subr.bf16.mxu0 (%p204_p0), %v411_v26 }
 0x3bf   :  { %436 = vmatpush1.bf16.msra.mxu1 (%p204_p0), %v418_v32  ;;  %521 = vmatpush1.bf16.msra.mxu0 (%p204_p0), %v410_v36 }
 0x429   :  { %206 = sbr.rel (!%p204_p0) target bundleno = 246 (0xf6), region = 118 }
 0x42a   : > { %v362_v21 = vpop.permute.xlu0 %361 }
 0x42b   : > { %365 = vst.msk [vmem:[%s364_s18] sm:$0xff] %vm220_vm2, %v362_v21  ;;  %v646_v21 = vpack.c.bf16 (%p204_p0), %v2065_v17, %v2060_v16 }
 0x42e   : > { %v368_v22 = vpop.permute.xlu1 %367 }
 0x42f   : > { %371 = vst.msk [vmem:[%s370_s19] sm:$0xff] %vm220_vm2, %v368_v22  ;;  %v647_v22 = vpack.c.bf16 (%p204_p0), %v2077_v20, %v2072_v19 }
 0x432   :  { %v372_v52 = vld [vmem:[#allocation4] sm:$0xff]  ;;  %v373_v54 = vld [vmem:[#allocation4 + $0x8] sm:$0xff]  ;;  %v374_v59 = vld [vmem:[#allocation4 + $0x10] sm:$0xff] }
 0x433   :  { %v404_v56 = vpack.c.bf16 %v373_v54, %v372_v52  ;;  %v375_v60 = vld [vmem:[#allocation4 + $0x18] sm:$0xff]  ;;  %v376_v1 = vld [vmem:[#allocation4 + $0x20] sm:$0xff]  ;;  %v377_v2 = vld [vmem:[#allocation4 + $0x28] sm:$0xff] }
 0x434   :  { %v405_v62 = vpack.c.bf16 %v375_v60, %v374_v59  ;;  %v406_v5 = vpack.c.bf16 %v377_v2, %v376_v1  ;;  %v378_v8 = vld [vmem:[#allocation4 + $0x30] sm:$0xff]  ;;  %v379_v9 = vld [vmem:[#allocation4 + $0x38] sm:$0xff] }
 0x435   :  { %1277 = vmatmul.mubr.msk.bf16.vlgmr.msra.gmra.mrb[0].mxu0 %vm220_vm2, %v404_v56  ;;  %v407_v11 = vpack.c.bf16 %v379_v9, %v378_v8 }
 0x436   :  { %v380_v34 = vld [vmem:[#allocation5] sm:$0xff]  ;;  %v381_v35 = vld [vmem:[#allocation5 + $0x8] sm:$0xff]  ;;  %v382_v57 = vld [vmem:[#allocation5 + $0x10] sm:$0xff]  ;;  %560 = vmatprep.mubr.bf16.mxu0 %v1682_v3 }
 0x437   :  { %v412_v55 = vpack.c.bf16 %v381_v35, %v380_v34  ;;  %v383_v58 = vld [vmem:[#allocation5 + $0x18] sm:$0xff]  ;;  %v384_v63 = vld [vmem:[#allocation5 + $0x20] sm:$0xff]  ;;  %v385_v0 = vld [vmem:[#allocation5 + $0x28] sm:$0xff] }
 0x438   :  { %v413_v61 = vpack.c.bf16 %v383_v58, %v382_v57  ;;  %v414_v4 = vpack.c.bf16 %v385_v0, %v384_v63  ;;  %v386_v6 = vld [vmem:[#allocation5 + $0x30] sm:$0xff]  ;;  %v387_v7 = vld [vmem:[#allocation5 + $0x38] sm:$0xff] }
 0x439   :  { %1273 = vmatmul.mubr.msk.bf16.vlgmr.msra.gmra.mrb[0].mxu1 %vm220_vm2, %v412_v55  ;;  %v415_v10 = vpack.c.bf16 %v387_v7, %v386_v6 }
 0x43a   :  { %475 = vmatprep.mubr.bf16.mxu1 %v1682_v3 }
 0x43d   :  { %1278 = vmatmul.mubr.msk.bf16.gmra.mrb[4].mxu0 %vm220_vm2, %v405_v62 }
 0x43e   :  { %570 = vmatprep.mubr.bf16.mxu0 %v1682_v3 }
 0x441   :  { %1274 = vmatmul.mubr.msk.bf16.gmra.mrb[4].mxu1 %vm220_vm2, %v413_v61 }
 0x442   :  { %485 = vmatprep.mubr.bf16.mxu1 %v1682_v3 }
 0x445   :  { %1279 = vmatmul.mubr.msk.bf16.gmra.mrb[8].mxu0 %vm220_vm2, %v406_v5 }
 0x446   :  { %580 = vmatprep.mubr.bf16.mxu0 %v1682_v3 }
 0x449   :  { %1275 = vmatmul.mubr.msk.bf16.gmra.mrb[8].mxu1 %vm220_vm2, %v414_v4 }
 0x44a   :  { %495 = vmatprep.mubr.bf16.mxu1 %v1682_v3  ;;  %v2048_v3 = vld [vmem:[%s2297_s5 + $0x10] sm:$0xff]  ;;  %s2116_s5 = smov 0  }
 0x44b   :  { %v640_v18 = vpack.c.bf16 %v2053_v14, %v2048_v3 }
 0x44d   :  { %1280 = vmatmul.mubr.msk.bf16.gmra.mrb[12].mxu0 %vm220_vm2, %v407_v11 }
 0x451   :  { %1276 = vmatmul.mubr.msk.bf16.gmra.mrb[12].mxu1 %vm220_vm2, %v415_v10 }
 0x508   :  { %v552_v28 = vpop.f32.mrb[0].mxu0 }
 0x509   :  { %v554_v40 = vpop.f32.mrb[1].mxu0 }
 0x50a   :  { %v556_v43 = vpop.f32.mrb[2].mxu0 }
 0x50b   :  { %v558_v47 = vpop.f32.mrb[3].mxu0 }
 0x50c   :  { %v467_v24 = vpop.f32.mrb[0].mxu1 }
 0x50d   :  { %v469_v37 = vpop.f32.mrb[1].mxu1  ;;  %v553_v39 = vadd.f32 %v552_v28, %v467_v24 }
 0x50e   :  { %v471_v41 = vpop.f32.mrb[2].mxu1  ;;  %v555_v42 = vadd.f32 %v554_v40, %v469_v37 }
 0x50f   :  { %v473_v44 = vpop.f32.mrb[3].mxu1  ;;  %v603_v45 = vadd.f32 %v2087_v29, %v553_v39  ;;  %v557_v46 = vadd.f32 %v556_v43, %v471_v41 }
 0x510   :  { %v604_v48 = vadd.f32 %v2090_v38, %v555_v42  ;;  %v559_v25 = vadd.f32 %v558_v47, %v473_v44  ;;  %v562_v31 = vpop.f32.mrb[4].mxu0 }
 0x511   :  { %619 = vst [vmem:[#allocation2] sm:$0xff] %v603_v45  ;;  %v605_v26 = vadd.f32 %v2087_v29, %v557_v46  ;;  %v564_v34 = vpop.f32.mrb[5].mxu0 }
 0x512   :  { %627 = vst [vmem:[#allocation3] sm:$0xff] %v604_v48  ;;  %v606_v27 = vadd.f32 %v2090_v38, %v559_v25  ;;  %v566_v52 = vpop.f32.mrb[6].mxu0 }
 0x513   :  { %620 = vst [vmem:[#allocation2 + $0x8] sm:$0xff] %v605_v26  ;;  %v568_v57 = vpop.f32.mrb[7].mxu0 }
 0x514   :  { %v477_v30 = vpop.f32.mrb[4].mxu1  ;;  %628 = vst [vmem:[#allocation3 + $0x8] sm:$0xff] %v606_v27 }
 0x515   :  { %v479_v32 = vpop.f32.mrb[5].mxu1  ;;  %v563_v33 = vadd.f32 %v562_v31, %v477_v30 }
 0x516   :  { %v481_v35 = vpop.f32.mrb[6].mxu1  ;;  %v565_v36 = vadd.f32 %v564_v34, %v479_v32  ;;  %v2108_v32 = vmov 0.0   ;;  %v2112_v34 = vmov 0.0  }
 0x517   :  { %v483_v54 = vpop.f32.mrb[7].mxu1  ;;  %v607_v55 = vadd.f32 %v2087_v29, %v563_v33  ;;  %v567_v56 = vadd.f32 %v566_v52, %v481_v35  ;;  %v2110_v33 = vmov 0.0   ;;  %v2114_v35 = vmov 0.0  }
 0x518   :  { %v608_v58 = vadd.f32 %v2090_v38, %v565_v36  ;;  %v569_v59 = vadd.f32 %v568_v57, %v483_v54  ;;  %v572_v63 = vpop.f32.mrb[8].mxu0 }
 0x519   :  { %621 = vst [vmem:[#allocation2 + $0x10] sm:$0xff] %v607_v55  ;;  %v609_v60 = vadd.f32 %v2087_v29, %v567_v56  ;;  %v574_v2 = vpop.f32.mrb[9].mxu0 }
 0x51a   :  { %629 = vst [vmem:[#allocation3 + $0x10] sm:$0xff] %v608_v58  ;;  %v610_v61 = vadd.f32 %v2090_v38, %v569_v59  ;;  %v576_v6 = vpop.f32.mrb[10].mxu0 }
 0x51b   :  { %622 = vst [vmem:[#allocation2 + $0x18] sm:$0xff] %v609_v60  ;;  %v578_v10 = vpop.f32.mrb[11].mxu0 }
 0x51c   :  { %v487_v62 = vpop.f32.mrb[8].mxu1  ;;  %630 = vst [vmem:[#allocation3 + $0x18] sm:$0xff] %v610_v61 }
 0x51d   :  { %v489_v0 = vpop.f32.mrb[9].mxu1  ;;  %v573_v1 = vadd.f32 %v572_v63, %v487_v62 }
 0x51e   :  { %v491_v4 = vpop.f32.mrb[10].mxu1  ;;  %v575_v5 = vadd.f32 %v574_v2, %v489_v0 }
 0x51f   :  { %v493_v7 = vpop.f32.mrb[11].mxu1  ;;  %v611_v8 = vadd.f32 %v2087_v29, %v573_v1  ;;  %v577_v9 = vadd.f32 %v576_v6, %v491_v4 }
 0x520   :  { %v612_v11 = vadd.f32 %v2090_v38, %v575_v5  ;;  %v579_v23 = vadd.f32 %v578_v10, %v493_v7  ;;  %v582_v39 = vpop.f32.mrb[12].mxu0 }
 0x521   :  { %623 = vst [vmem:[#allocation2 + $0x20] sm:$0xff] %v611_v8  ;;  %v613_v24 = vadd.f32 %v2087_v29, %v577_v9  ;;  %v584_v42 = vpop.f32.mrb[13].mxu0 }
 0x522   :  { %631 = vst [vmem:[#allocation3 + $0x20] sm:$0xff] %v612_v11  ;;  %v614_v28 = vadd.f32 %v2090_v38, %v579_v23  ;;  %v586_v45 = vpop.f32.mrb[14].mxu0 }
 0x523   :  { %624 = vst [vmem:[#allocation2 + $0x28] sm:$0xff] %v613_v24  ;;  %v588_v25 = vpop.f32.mrb[15].mxu0 }
 0x524   :  { %v497_v37 = vpop.f32.mrb[12].mxu1  ;;  %632 = vst [vmem:[#allocation3 + $0x28] sm:$0xff] %v614_v28 }
 0x525   :  { %v499_v40 = vpop.f32.mrb[13].mxu1  ;;  %v583_v41 = vadd.f32 %v582_v39, %v497_v37 }
 0x526   :  { %v501_v43 = vpop.f32.mrb[14].mxu1  ;;  %v585_v44 = vadd.f32 %v584_v42, %v499_v40 }
 0x527   :  { %v503_v46 = vpop.f32.mrb[15].mxu1  ;;  %v615_v47 = vadd.f32 %v2087_v29, %v583_v41  ;;  %v587_v48 = vadd.f32 %v586_v45, %v501_v43 }
 0x528   :  { %v616_v26 = vadd.f32 %v2090_v38, %v585_v44  ;;  %v589_v27 = vadd.f32 %v588_v25, %v503_v46 }
 0x529   :  { %625 = vst [vmem:[#allocation2 + $0x30] sm:$0xff] %v615_v47  ;;  %v617_v30 = vadd.f32 %v2087_v29, %v587_v48 }
 0x52a   :  { %633 = vst [vmem:[#allocation3 + $0x30] sm:$0xff] %v616_v26  ;;  %v618_v31 = vadd.f32 %v2090_v38, %v589_v27 }
 0x52b   :  { %626 = vst [vmem:[#allocation2 + $0x38] sm:$0xff] %v617_v30 }
 0x52c   :  { %634 = vst [vmem:[#allocation3 + $0x38] sm:$0xff] %v618_v31 }
 0x52d LB: > { %v1687_v29 = vmov 0.0   ;;  %v662_v38 = vpack.c.bf16 %v1660_v35, %v1660_v35  ;;  %vm1688_vm3 = vmmov 0   ;;  %s1689_s6 = smov 32   ;;  %v713_v36 = vpack.c.bf16 %v1652_v33, %v1652_v33  ;;  %s1285_s24 = sshll.u32 %s1664_s5, 3  ;;  %s1664_s5 = sphi %s2116_s5, %s653_s5   ;;  %v1660_v35 = vphi %v2114_v35, %v782_v35   ;;  %v1656_v34 = vphi %v2112_v34, %v776_v34   ;;  %v1652_v33 = vphi %v2110_v33, %v804_v33   ;;  %v1648_v32 = vphi %v2108_v32, %v798_v32  }
 0x52e   : > { %1340 = vmatprep.subr.bf16.mxu0 %v1687_v29  ;;  %1348 = vmatprep.subr.bf16.mxu1 %v1687_v29  ;;  %s658_s1 = ssub.s32 7, %s1664_s5  ;;  %s660_s26 = scalar_lea.vmem [#allocation2], %s1285_s24 }
 0x52f   : > { %1341 = vmatpush3.bf16.msra.mxu0 %v639_v15  ;;  %1349 = vmatpush3.bf16.msra.mxu1 %v646_v21  ;;  %s2147_s25 = sshll.u32 %s658_s1, 3  ;;  %s1690_s4 = smov 64  }
 0x530   : > { %1342 = vmatprep.subr.bf16.mxu0 %v1687_v29  ;;  %1344 = vmatprep.mubr.msk.bf16.mxu0 %vm1688_vm3, %v1687_v29  ;;  %s711_s27 = scalar_lea.vmem [#allocation3], %s2147_s25  ;;  %s809_s28 = scalar_lea.vmem [#allocation4], %s1285_s24 }
 0x531   : > { %664 = vrot.lane.b32.xlu0 %v662_v38, %s1689_s6  ;;  %1350 = vmatprep.subr.bf16.mxu1 %v1687_v29  ;;  %s815_s29 = scalar_lea.vmem [#allocation5], %s2147_s25  ;;  %s653_s5 = sadd.s32 1, %s1664_s5  }
 0x532   : > { %1352 = vmatprep.mubr.msk.bf16.mxu1 %vm1688_vm3, %v1687_v29  ;;  %v661_v55 = vld [vmem:[%s660_s26] sm:$0xff]  ;;  %p650_p1 = scmp.ge.s32.totalorder %s653_s5, 8  }
 0x533   : > { %1343 = vmatpush3.bf16.msra.mxu0 %v640_v18  ;;  %1351 = vmatpush3.bf16.msra.mxu1 %v647_v22  ;;  %v712_v60 = vld [vmem:[%s711_s27] sm:$0xff]  ;;  %v838_v30 = vld [vmem:[%s2299_s7 + $0x28] sm:$0xff] (%p650_p1)  ;;  %v839_v12 = vld [vmem:[%s2299_s7 + $0x30] sm:$0xff] (%p650_p1)  ;;  %s2248_s18 = smov (%p650_p1), 1  }
 0x534   :  { %v837_v27 = vld [vmem:[%s2299_s7 + $0x20] sm:$0xff] (%p650_p1)  ;;  %v840_v13 = vld [vmem:[%s2299_s7 + $0x38] sm:$0xff] (%p650_p1)  ;;  %v835_v15 = vld [vmem:[%s2299_s7 + $0x10] sm:$0xff] (%p650_p1) }
 0x535   : > { %715 = vrot.lane.b32.xlu0 %v713_v36, %s1689_s6  ;;  %v833_v31 = vld [vmem:[%s2299_s7] sm:$0xff] (%p650_p1)  ;;  %v851_v29 = vpack.c.bf16 (%p650_p1), %v838_v30, %v837_v27  ;;  %v852_v14 = vpack.c.bf16 (%p650_p1), %v840_v13, %v839_v12  ;;  %v836_v16 = vld [vmem:[%s2299_s7 + $0x18] sm:$0xff] (%p650_p1) }
 0x536   :  { %v846_v18 = vpack.c.bf16 (%p650_p1), %v836_v16, %v835_v15 }
 0x537   :  { %1356 = vmatprep.subr.bf16.mxu1 (%p650_p1), %v851_v29 }
 0x5a3   : > { %v665_v52 = vpop.permute.xlu0 %664 }
 0x5a4   : > { %1345 = vmatmul.mubr.msk.bf16.vlgmr.msra.gmra.mrb[0].mxu0 %vm220_vm2, %v665_v52 }
 0x5a7   : > { %v716_v54 = vpop.permute.xlu0 %715 }
 0x5a8   : > { %1353 = vmatmul.mubr.msk.bf16.vlgmr.msra.gmra.mrb[0].mxu1 %vm220_vm2, %v716_v54 }
 0x5a9   :  { %1357 = vmatpush3.bf16.msra.mxu1 (%p650_p1), %v851_v29 }
 0x5aa   :  { %1358 = vmatprep.subr.bf16.mxu1 (%p650_p1), %v852_v14 }
 0x5ad   :  { %1359 = vmatpush3.bf16.msra.mxu1 (%p650_p1), %v852_v14 }
 0x677   : > { %v703_v56 = vpop.f32.mrb[0].mxu0 }
 0x678   : > { %v709_v57 = vadd.f32 %v703_v56, %v661_v55  ;;  %v1346_v58 = vpop.f32.mrb[1].mxu0 }
 0x679   : > { %v706_v59 = vpop.f32.mrb[2].mxu0 }
 0x67a   : > { %1552 = vtanh.f32 %v709_v57  ;;  %v1347_v61 = vpop.f32.mrb[3].mxu0  ;;  %v761_v6 = vmul.f32 0.5, %v709_v57 }
 0x67b   : > { %v754_v62 = vpop.f32.mrb[0].mxu1 }
 0x67c   : > { %v760_v63 = vadd.f32 %v754_v62, %v712_v60  ;;  %v1354_v0 = vpop.f32.mrb[1].mxu1 }
 0x67d   : > { %v757_v1 = vpop.f32.mrb[2].mxu1 }
 0x67e   : > { %1554 = vtanh.f32 %v760_v63  ;;  %v1355_v2 = vpop.f32.mrb[3].mxu1  ;;  %v783_v7 = vmul.f32 0.5, %v760_v63 }
 0x67f   : > { %1556 = vtanh.f32 %v761_v6  ;;  %v1691_v6 = vmov (%p650_p1), -10000.0  }
 0x680   : > { %1558 = vtanh.f32 %v783_v7 }
 0x684   : > { %v1553_v4 = vpop.eup %1552 }
 0x685   : > { %768 = vrot.lane.b32.xlu1 %v1553_v4, %s1690_s4  ;;  %v2211_v4 = vand.u32 (%p650_p1), 127, %v77_v49 }
 0x687   :  { %vm1033_vm4 = vcmp.eq.s32.totalorder (%p650_p1), %v2211_v4, 4 }
 0x688   : > { %v1555_v5 = vpop.eup %1554  ;;  %v1034_v7 = vsel (%p650_p1), %vm1033_vm4, 0.0, %v1691_v6  }
 0x689   : > { %790 = vrot.lane.b32.xlu1 %v1555_v5, %s1690_s4  ;;  %v1557_v8 = vpop.eup %1556  ;;  %v2217_v5 = vld [vmem:[%s2301_s9] sm:$0xff] (%p650_p1) }
 0x68a   : > { %v763_v9 = vmul.f32 0.5, %v1557_v8  ;;  %v1559_v10 = vpop.eup %1558 }
 0x68b   : > { %v785_v23 = vmul.f32 0.5, %v1559_v10  ;;  %v1297_v10 = vld [vmem:[%s2300_s8] ss:$0 sm:$0xff] (%p650_p1) }
 0x68c   : > { %v764_v11 = vadd.f32 0.5, %v763_v9 }
 0x68d   : > { %v786_v37 = vadd.f32 0.5, %v785_v23 }
 0x68e   : > { %v766_v41 = vmul.f32 %v1656_v34, %v764_v11 }
 0x68f   : > { %v788_v43 = vmul.f32 %v1648_v32, %v786_v37 }
 0x6f7   : > { %v769_v24 = vpop.permute.xlu1 %768 }
 0x6f8   : > { %v771_v28 = vmul.f32 %v769_v24, %v764_v11 }
 0x6fa   : > { %773 = vrot.lane.b32.xlu0 %v771_v28, %s1689_s6 }
 0x6fb   : > { %v791_v39 = vpop.permute.xlu1 %790 }
 0x6fc   : > { %v793_v40 = vmul.f32 %v791_v39, %v786_v37 }
 0x6fe   : > { %795 = vrot.lane.b32.xlu1 %v793_v40, %s1689_s6 }
 0x76c   : > { %v774_v42 = vpop.permute.xlu0 %773 }
 0x76d   : > { %v776_v34 = vadd.f32 %v774_v42, %v766_v41  }
 0x76f   : > { %1560 = vtanh.f32 %v776_v34 }
 0x770   : > { %v796_v44 = vpop.permute.xlu1 %795 }
 0x771   : > { %v798_v32 = vadd.f32 %v796_v44, %v788_v43  }
 0x773   : > { %1562 = vtanh.f32 %v798_v32 }
 0x779   : > { %v1561_v45 = vpop.eup %1560 }
 0x77a   : > { %779 = vrot.lane.b32.xlu0 %v1561_v45, %s1690_s4 }
 0x77d   : > { %v1563_v46 = vpop.eup %1562 }
 0x77e   : > { %801 = vrot.lane.b32.xlu1 %v1563_v46, %s1690_s4 }
 0x7ec   : > { %v780_v47 = vpop.permute.xlu0 %779 }
 0x7ed   : > { %v782_v35 = vmul.f32 %v780_v47, %v764_v11  }
 0x7ef   : > { %806 = vrot.lane.b32.xlu0 %v782_v35, %s1689_s6  ;;  %v834_v35 = vld [vmem:[%s2299_s7 + $0x8] sm:$0xff] (%p650_p1) }
 0x7f0   : > { %v802_v48 = vpop.permute.xlu1 %801  ;;  %v845_v3 = vpack.c.bf16 (%p650_p1), %v834_v35, %v833_v31 }
 0x7f1   : > { %v804_v33 = vmul.f32 %v802_v48, %v786_v37  }
 0x7f2   :  { %1368 = vmatprep.subr.bf16.mxu0 (%p650_p1), %v845_v3 }
 0x7f3   : > { %812 = vrot.lane.b32.xlu1 %v804_v33, %s1689_s6  ;;  %1369 = vmatpush3.bf16.msra.mxu0 (%p650_p1), %v845_v3 }
 0x7f4   :  { %1370 = vmatprep.subr.bf16.mxu0 (%p650_p1), %v846_v18 }
 0x7f7   :  { %1371 = vmatpush3.bf16.msra.mxu0 (%p650_p1), %v846_v18 }
 0x860   :  { %652 = sbr.rel (!%p650_p1) target bundleno = 1325 (0x52d), region = 129 }
 0x861   : > { %v807_v25 = vpop.permute.xlu0 %806 }
 0x862   : > { %810 = vst.msk [vmem:[%s809_s28] sm:$0xff] %vm220_vm2, %v807_v25 }
 0x865   : > { %v813_v26 = vpop.permute.xlu1 %812 }
 0x866   : > { %816 = vst.msk [vmem:[%s815_s29] sm:$0xff] %vm220_vm2, %v813_v26 }
 0x869   :  { %v817_v20 = vld [vmem:[#allocation4] sm:$0xff]  ;;  %v818_v21 = vld [vmem:[#allocation4 + $0x8] sm:$0xff]  ;;  %v819_v38 = vld [vmem:[#allocation4 + $0x10] sm:$0xff] }
 0x86a   :  { %v841_v32 = vpack.c.bf16 %v818_v21, %v817_v20  ;;  %v820_v36 = vld [vmem:[#allocation4 + $0x18] sm:$0xff]  ;;  %v821_v55 = vld [vmem:[#allocation4 + $0x20] sm:$0xff]  ;;  %v822_v56 = vld [vmem:[#allocation4 + $0x28] sm:$0xff] }
 0x86b   :  { %v842_v58 = vpack.c.bf16 %v820_v36, %v819_v38  ;;  %v843_v60 = vpack.c.bf16 %v822_v56, %v821_v55  ;;  %v823_v63 = vld [vmem:[#allocation4 + $0x30] sm:$0xff]  ;;  %v824_v0 = vld [vmem:[#allocation4 + $0x38] sm:$0xff] }
 0x86c   :  { %1372 = vmatprep.mubr.msk.bf16.mxu0 %vm220_vm2, %v841_v32  ;;  %v844_v2 = vpack.c.bf16 %v824_v0, %v823_v63 }
 0x86d   :  { %v825_v17 = vld [vmem:[#allocation5] sm:$0xff]  ;;  %v826_v19 = vld [vmem:[#allocation5 + $0x8] sm:$0xff]  ;;  %v827_v33 = vld [vmem:[#allocation5 + $0x10] sm:$0xff]  ;;  %1373 = vmatmul.mubr.msk.bf16.vlgmr.msra.gmra.mrb[0].mxu0 %vm220_vm2, %v842_v58 }
 0x86e   :  { %v847_v22 = vpack.c.bf16 %v826_v19, %v825_v17  ;;  %v828_v34 = vld [vmem:[#allocation5 + $0x18] sm:$0xff]  ;;  %v829_v52 = vld [vmem:[#allocation5 + $0x20] sm:$0xff]  ;;  %v830_v54 = vld [vmem:[#allocation5 + $0x28] sm:$0xff]  ;;  %1376 = vmatprep.mubr.msk.bf16.mxu0 %vm220_vm2, %v843_v60 }
 0x86f   :  { %v848_v57 = vpack.c.bf16 %v828_v34, %v827_v33  ;;  %v849_v59 = vpack.c.bf16 %v830_v54, %v829_v52  ;;  %v831_v61 = vld [vmem:[#allocation5 + $0x30] sm:$0xff]  ;;  %v832_v62 = vld [vmem:[#allocation5 + $0x38] sm:$0xff] }
 0x870   :  { %1360 = vmatprep.mubr.msk.bf16.mxu1 %vm220_vm2, %v847_v22  ;;  %v850_v1 = vpack.c.bf16 %v832_v62, %v831_v61 }
 0x871   :  { %1361 = vmatmul.mubr.msk.bf16.vlgmr.msra.gmra.mrb[0].mxu1 %vm220_vm2, %v848_v57 }
 0x872   :  { %1364 = vmatprep.mubr.msk.bf16.mxu1 %vm220_vm2, %v849_v59 }
 0x875   :  { %1377 = vmatmul.mubr.msk.bf16.gmra.mrb[4].mxu0 %vm220_vm2, %v844_v2 }
 0x879   :  { %1365 = vmatmul.mubr.msk.bf16.gmra.mrb[4].mxu1 %vm220_vm2, %v850_v1 }
 0x940   :  { %v1374_v9 = vpop.f32.mrb[0].mxu0 }
 0x941   :  { %v976_v24 = vpop.f32.mrb[1].mxu0 }
 0x942   :  { %v1375_v37 = vpop.f32.mrb[2].mxu0 }
 0x943   :  { %v979_v42 = vpop.f32.mrb[3].mxu0 }
 0x944   :  { %v1362_v8 = vpop.f32.mrb[0].mxu1 }
 0x945   :  { %v899_v11 = vpop.f32.mrb[1].mxu1  ;;  %v985_v23 = vadd.f32 %v1374_v9, %v1362_v8 }
 0x946   :  { %v1363_v49 = vpop.f32.mrb[2].mxu1  ;;  %v977_v28 = vadd.f32 %v976_v24, %v899_v11 }
 0x947   :  { %v902_v39 = vpop.f32.mrb[3].mxu1  ;;  %v1016_v40 = vadd.f32 %v1297_v10, %v985_v23  ;;  %v988_v41 = vadd.f32 %v1375_v37, %v1363_v49 }
 0x948   :  { %v1014_v43 = vadd.f32 %v1297_v10, %v977_v28  ;;  %v980_v44 = vadd.f32 %v979_v42, %v902_v39  ;;  %v1378_v48 = vpop.f32.mrb[4].mxu0 }
 0x949   :  { %1024 = vst [vmem:[%s2304_s12 + $0x10] sm:$0xff] %v1016_v40  ;;  %v1017_v45 = vadd.f32 %v1297_v10, %v988_v41  ;;  %v992_v27 = vpop.f32.mrb[5].mxu0 }
 0x94a   :  { %1022 = vst [vmem:[%s2304_s12] sm:$0xff] %v1014_v43  ;;  %v1015_v46 = vadd.f32 %v1297_v10, %v980_v44  ;;  %v1379_v29 = vpop.f32.mrb[6].mxu0 }
 0x94b   :  { %1025 = vst [vmem:[%s2304_s12 + $0x18] sm:$0xff] %v1017_v45  ;;  %v995_v3 = vpop.f32.mrb[7].mxu0 }
 0x94c   :  { %v1366_v47 = vpop.f32.mrb[4].mxu1  ;;  %1023 = vst [vmem:[%s2304_s12 + $0x8] sm:$0xff] %v1015_v46 }
 0x94d   :  { %v915_v25 = vpop.f32.mrb[5].mxu1  ;;  %v1001_v26 = vadd.f32 %v1378_v48, %v1366_v47 }
 0x94e   :  { %v1367_v30 = vpop.f32.mrb[6].mxu1  ;;  %v993_v31 = vadd.f32 %v992_v27, %v915_v25 }
 0x94f   :  { %v918_v35 = vpop.f32.mrb[7].mxu1  ;;  %v1020_v12 = vadd.f32 %v1297_v10, %v1001_v26  ;;  %v1004_v13 = vadd.f32 %v1379_v29, %v1367_v30 }
 0x950   :  { %v1018_v14 = vadd.f32 %v1297_v10, %v993_v31  ;;  %v996_v15 = vadd.f32 %v995_v3, %v918_v35 }
 0x951   :  { %1028 = vst [vmem:[%s2304_s12 + $0x30] sm:$0xff] %v1020_v12  ;;  %v1021_v16 = vadd.f32 %v1297_v10, %v1004_v13 }
 0x952   :  { %1026 = vst [vmem:[%s2304_s12 + $0x20] sm:$0xff] %v1018_v14  ;;  %v1019_v17 = vadd.f32 %v1297_v10, %v996_v15 }
 0x953   :  { %1029 = vst [vmem:[%s2304_s12 + $0x38] sm:$0xff] %v1021_v16 }
 0x954   :  { %1027 = vst [vmem:[%s2304_s12 + $0x28] sm:$0xff] %v1019_v17 }
 0x955 LB: > { %v1692_v18 = vmov 0   ;;  %v1693_v19 = vmov 2   ;;  %v1694_v20 = vmov 1   ;;  %v1695_v21 = vmov 3   ;;  %s1298_s19 = sshll.u32 %s1672_s18, 3  ;;  %s1040_s18 = sadd.s32 1, %s1672_s18   ;;  %s1672_s18 = sphi %s2248_s18, %s1040_s18   ;;  %v1668_v7 = vphi %v1034_v7, %v2308_v7  }
 0x956   : > { %1564 = vset.pattern.permute.xlu0 %v1692_v18  ;;  %1566 = vset.pattern.permute.xlu1 %v1693_v19  ;;  %v1696_v22 = vmov 4   ;;  %v1697_v32 = vmov 5   ;;  %v1070_v34 = vsub.s32 2, %v1888_v50  ;;  %v1050_v36 = vrot.slane %v2217_v5, %v1891_v51  ;;  %s1115_s21 = scalar_lea.vmem %s2304_s12, %s1298_s19  ;;  %s1113_s22 = scalar_lea.vmem [#allocation6], %s1298_s19 }
 0x957   : > { %1044 = vperm.xlu0 %1564, %v1668_v7   ;;  %1065 = vperm.xlu1 %1566, %v1668_v7   ;;  %v1059_v52 = vrot.slane %v2217_v5, %v1897_v53  ;;  %v1082_v54 = vsub.s32 3, %v1888_v50  ;;  %v1094_v55 = vsub.s32 4, %v1888_v50  ;;  %v1106_v57 = vsub.s32 5, %v1888_v50  ;;  %p1037_p2 = scmp.ge.s32.totalorder %s1040_s18, 8  }
 0x958   : > { %v1071_v56 = vrot.slane %v2217_v5, %v1070_v34  ;;  %vm1120_vm10 = vcmask (%p1037_p2), 7168   ;;  %v1140_v31 = vsub.s32 (%p1037_p2), %v2211_v4, %v1888_v50  ;;  %vm1142_vm13 = vcmask (%p1037_p2), 57344   ;;  %s2285_s7 = smov (%p1037_p2), 0  }
 0x959   : > { %v1083_v62 = vrot.slane %v2217_v5, %v1082_v54  ;;  %v1095_v63 = vrot.slane %v2217_v5, %v1094_v55  ;;  %v1107_v1 = vrot.slane %v2217_v5, %v1106_v57 }
 0x95b   : > { %1565 = vset.pattern.permute.xlu0 %v1694_v20  ;;  %1567 = vset.pattern.permute.xlu1 %v1695_v21  ;;  %v1116_v40 = vld [vmem:[%s1115_s21] sm:$0xff] }
 0x95c   : > { %1053 = vperm.xlu0 %1565, %v1668_v7   ;;  %1077 = vperm.xlu1 %1567, %v1668_v7  }
 0x960   : > { %1568 = vset.pattern.permute.xlu1 %v1696_v22  ;;  %1569 = vset.pattern.permute.xlu0 %v1697_v32 }
 0x961   : > { %1089 = vperm.xlu1 %1568, %v1668_v7   ;;  %1101 = vperm.xlu0 %1569, %v1668_v7  }
 0x9d6   : > { %v1045_v33 = vpop.permute.xlu0 %1044  ;;  %v1066_v38 = vpop.permute.xlu1 %1065 }
 0x9d7   : > { %v1051_v60 = vadd.f32 %v1050_v36, %v1045_v33  ;;  %v1072_v0 = vadd.f32 %v1071_v56, %v1066_v38 }
 0x9db   : > { %v1054_v58 = vpop.permute.xlu0 %1053  ;;  %v1078_v59 = vpop.permute.xlu1 %1077 }
 0x9dc   : > { %v1060_v61 = vadd.f32 %v1059_v52, %v1054_v58  ;;  %v1084_v7 = vadd.f32 %v1083_v62, %v1078_v59 }
 0x9de   : > { %vm1061_vm5 = vcmp.gt.f32.partialorder %v1060_v61, %v1051_v60 }
 0x9df   : > { %v1062_v2 = vsel %vm1061_vm5, %v1060_v61, %v1051_v60  ;;  %v1063_v6 = vsel %vm1061_vm5, 1, %v1692_v18 }
 0x9e0   : > { %vm1073_vm6 = vcmp.gt.f32.partialorder %v1072_v0, %v1062_v2  ;;  %v1090_v8 = vpop.permute.xlu1 %1089  ;;  %v1102_v9 = vpop.permute.xlu0 %1101 }
 0x9e1   : > { %v1074_v10 = vsel %vm1073_vm6, %v1072_v0, %v1062_v2  ;;  %v1075_v11 = vsel %vm1073_vm6, 2, %v1063_v6  ;;  %v1096_v23 = vadd.f32 %v1095_v63, %v1090_v8  ;;  %v1108_v24 = vadd.f32 %v1107_v1, %v1102_v9 }
 0x9e2   : > { %vm1085_vm7 = vcmp.gt.f32.partialorder %v1084_v7, %v1074_v10 }
 0x9e3   : > { %v1087_v49 = vsel %vm1085_vm7, 3, %v1075_v11  ;;  %v1086_v28 = vsel %vm1085_vm7, %v1084_v7, %v1074_v10 }
 0x9e4   : > { %vm1097_vm8 = vcmp.gt.f32.partialorder %v1096_v23, %v1086_v28  ;;  %1039 = sbr.rel (!%p1037_p2) target bundleno = 2389 (0x955), region = 140 }
 0x9e5   : > { %v1099_v37 = vsel %vm1097_vm8, 4, %v1087_v49  ;;  %v1098_v39 = vsel %vm1097_vm8, %v1096_v23, %v1086_v28 }
 0x9e6   : > { %vm1109_vm9 = vcmp.gt.f32.partialorder %v1108_v24, %v1098_v39 }
 0x9e7   : > { %v1110_v41 = vsel %vm1109_vm9, %v1108_v24, %v1098_v39  ;;  %v1111_v42 = vsel %vm1109_vm9, 5, %v1099_v37 }
 0x9e8   : > { %1114 = vst [vmem:[%s1113_s22] sm:$0xff] %v1111_v42  ;;  %v1117_v43 = vadd.f32 %v1116_v40, %v1110_v41  }
 0x9ea   : > { %v2308_v7 = vmov %v1117_v43  ;;  %1118 = vmax.xlane.f32.xlu0 (%p1037_p2), %v1117_v43 }
 0xa77   :  { %v1119_v44 = vpop.xlane.xlu0 %1118 }
 0xa78   :  { %1121 = vst.msk [vmem:[%s2302_s10] sm:$0xff] %vm1120_vm10, %v1119_v44  ;;  %vm1122_vm11 = vcmp.ge.f32.partialorder %v1117_v43, %v1119_v44 }
 0xa79   :  { %v1123_v45 = vsel %vm1122_vm11, %v2211_v4, 128 }
 0xa7a   :  { %v1125_v46 = vshra.s32 %v1123_v45, 16  ;;  %v1124_v48 = vand.u32 65535, %v1123_v45 }
 0xa7c   :  { %v1127_v47 = vcvt.s32.f32 %v1125_v46  ;;  %v1126_v26 = vcvt.s32.f32 %v1124_v48 }
 0xa7e   :  { %1128 = vmin.xlane.f32.xlu0 %v1127_v47 }
 0xb0b   :  { %v1129_v25 = vpop.xlane.xlu0 %1128 }
 0xb0c   :  { %vm1130_vm12 = vcmp.eq.f32.partialorder %v1127_v47, %v1129_v25  ;;  %v1135_v30 = vcvt.f32.s32 %v1129_v25 }
 0xb0d   :  { %v1131_v27 = vsel %vm1130_vm12, %v1126_v26, inf }
 0xb0e   :  { %1132 = vmin.xlane.f32.xlu1 %v1131_v27  ;;  %v1136_v53 = vshll.u32 %v1135_v30, 16 }
 0xb9b   :  { %v1133_v51 = vpop.xlane.xlu1 %1132 }
 0xb9c   :  { %v1134_v5 = vcvt.f32.s32 %v1133_v51 }
 0xb9e   :  { %v1137_v29 = vadd.s32 %v1136_v53, %v1134_v5  }
 0xba0   :  { %v1141_v35 = vrot.slane %v1137_v29, %v1140_v31  ;;  %v1674_v12 = vmov %v1137_v29  }
 0xba2   :  { %1143 = vst.msk [vmem:[%s2303_s11 + $0x7] sm:$0x1] %vm1142_vm13, %v1141_v35 }
 0xba3 LB: > { %s1153_s6 = ssub.s32 7, %s1680_s7  ;;  %vm1152_vm14 = vcmp.eq.s32.totalorder %v2211_v4, %v1676_v12  ;;  %s1151_s9 = ssub.s32 6, %s1680_s7  ;;  %s1680_s7 = sphi %s2285_s7, %s1149_s7   ;;  %v1676_v12 = vphi %v1674_v12, %v1169_v12  }
 0xba4   : > { %s1299_s24 = sshll.u32 %s1153_s6, 3  ;;  %s1174_s27 = scalar_lea.vmem %s2303_s11, %s1151_s9 }
 0xba5   : > { %s1155_s1 = scalar_lea.vmem [#allocation6], %s1299_s24  ;;  %s1149_s7 = sadd.s32 1, %s1680_s7  }
 0xba6   : > { %v1156_v50 = vld [vmem:[%s1155_s1] sm:$0xff]  ;;  %p1146_p3 = scmp.ge.s32.totalorder %s1149_s7, 7  }
 0xba7   : > { %v1157_v13 = vsel %vm1152_vm14, %v1156_v50, 0 }
 0xba8   : > { %v1159_v3 = vshrl.u32 %v1157_v13, 16  ;;  %v1158_v14 = vand.u32 65535, %v1157_v13 }
 0xbaa   : > { %v1161_v15 = vcvt.s32.f32 %v1159_v3  ;;  %v1160_v16 = vcvt.s32.f32 %v1158_v14 }
 0xbac   : > { %1164 = vadd.xlane.f32.xlu0 %v1161_v15 }
 0xbb0   : > { %1162 = vadd.xlane.f32.xlu0 %v1160_v16 }
 0xc39   : > { %v1165_v17 = vpop.xlane.xlu0 %1164 }
 0xc3a   : > { %v1167_v18 = vcvt.f32.s32 %v1165_v17 }
 0xc3c   : > { %v1168_v20 = vshll.u32 %v1167_v18, 16 }
 0xc3d   : > { %v1163_v19 = vpop.xlane.xlu0 %1162 }
 0xc3e   : > { %v1166_v21 = vcvt.f32.s32 %v1163_v19  ;;  %1148 = sbr.rel (!%p1146_p3) target bundleno = 2979 (0xba3), region = 151 }
 0xc40   : > { %v1169_v12 = vadd.s32 %v1168_v20, %v1166_v21  }
 0xc42   : > { %v1173_v22 = vrot.slane %v1169_v12, %v1140_v31 }
 0xc44   : > { %1175 = vst.msk [vmem:[%s1174_s27] sm:$0x1] %vm1142_vm13, %v1173_v22 }

</bundles_post_ra>
